<compile_context>
chip_gen: v6e
topology: v6e:2x2x1
jax: 0.10.0
libtpu: 0.0.40
codegen_flags: <defaults>
</compile_context>

<pallas_src>
import functools

import numpy as np

import jax
import jax.numpy as jnp
from jax.experimental import pallas as pl
from jax.experimental.pallas import tpu as pltpu


LANE = 128     # TPU lane width: final output padded to this for unmasked stores
SUBPACK = 16   # bf16 sublane packing: pad contraction dims to multiples of this


def _round_up(x, m):
    return (x + m - 1) // m * m


# ------------------------------ Pallas kernel ------------------------------ #

def _fused_cnn_kernel(x_ref, t1_ref, t2_ref, t3_ref, o_ref):
    """o = relu(relu(relu([x,1,0...] @ T1aug) @ T2aug) @ T3aug).

    Biases are folded into the augmented T matrices (ones-column trick), so the
    whole network is three MXU matmuls with f32 accumulation and f32 ReLU
    epilogues.  Dot operands are bf16 on all of v5e/v6e/v7x; the epilogue stays
    f32 (v5e has no bf16 VPU) and activations are cast back to bf16 per layer.
    """
    a = x_ref[...]                                                     # bf16
    a = jnp.dot(a, t1_ref[...], preferred_element_type=jnp.float32)    # conv1+b1
    a = jnp.maximum(a, 0.0).astype(jnp.bfloat16)
    a = jnp.dot(a, t2_ref[...], preferred_element_type=jnp.float32)    # conv2+b2
    a = jnp.maximum(a, 0.0).astype(jnp.bfloat16)
    a = jnp.dot(a, t3_ref[...], preferred_element_type=jnp.float32)    # flatten+fc+b3
    o_ref[...] = jnp.maximum(a, 0.0).astype(o_ref.dtype)


@functools.partial(jax.jit, static_argnames=("hidden_size", "block_m"))
def cnn_forward(params, x_nchw, *, hidden_size, block_m=None):
    """Fused forward: a single pallas_call for the entire network."""
    t1, t2, t3 = params["t1"], params["t2"], params["t3"]
    n = x_nchw.shape[0]
    feat = int(np.prod(x_nchw.shape[1:]))
    k1, w1 = t1.shape
    k2, w2 = t2.shape
    k3, w3 = t3.shape
    assert w1 == k2 and w2 == k3 and w3 == LANE and hidden_size <= LANE

    # Augmented input: [x_flat, 1, 0, ..., 0]; the 1 carries the folded biases.
    x_flat = x_nchw.reshape(n, feat)
    pad = k1 - feat
    aug = jnp.concatenate(
        [jnp.ones((n, 1), x_flat.dtype), jnp.zeros((n, pad - 1), x_flat.dtype)],
        axis=1)
    x_aug = jnp.concatenate([x_flat, aug], axis=1).astype(jnp.bfloat16)

    bm = n if block_m is None else block_m
    assert n % bm == 0  # TODO(synk): ragged batch tails not handled
    grid = (n // bm,)

    # Conservative double-buffered VMEM working-set guard (32 MiB scoped default;
    # v7x physical VMEM is only 64 MiB).  If this ever fires, switch conv1 to
    # in-kernel im2col or tile T1 over its rows with another grid axis.
    vmem_bytes = 2 * (bm * k1 * 2 + k1 * w1 * 2 + k2 * w2 * 2 + k3 * w3 * 2
                      + bm * w3 * 4)
    assert vmem_bytes < 32 * 1024 * 1024, vmem_bytes

    flops = 2 * n * (k1 * w1 + k2 * w2 + k3 * w3)
    bytes_accessed = (x_aug.size * 2 + t1.size * 2 + t2.size * 2 + t3.size * 2
                      + n * w3 * 4)

    out = pl.pallas_call(
        _fused_cnn_kernel,
        out_shape=jax.ShapeDtypeStruct((n, w3), jnp.float32),
        grid=grid,
        in_specs=[
            pl.BlockSpec((bm, k1), lambda i: (i, 0)),   # batch-tiled activations
            pl.BlockSpec((k1, w1), lambda i: (0, 0)),   # weights stay VMEM-resident
            pl.BlockSpec((k2, w2), lambda i: (0, 0)),
            pl.BlockSpec((k3, w3), lambda i: (0, 0)),
        ],
        out_specs=pl.BlockSpec((bm, w3), lambda i: (i, 0)),
        compiler_params=pltpu.CompilerParams(dimension_semantics=("parallel",)),
        cost_estimate=pl.CostEstimate(flops=flops, transcendentals=0,
                                      bytes_accessed=bytes_accessed),
    )(x_aug, t1, t2, t3)
    return out[:, :hidden_size]          # drop lane padding (columns >= hidden are 0)


# ----------------------- init-time (host) parameter prep ------------------- #

def _init_raw_params(key, input_shape, cfg):
    """Deterministic PyTorch-layout parameters (uniform fan-in init)."""
    in_channels, h, w = input_shape
    raw = {"convs": []}
    for k, c_out, s in zip(cfg["kernel_sizes"], cfg["layer_sizes"],
                           cfg["stride_sizes"]):
        key, k1, k2 = jax.random.split(key, 3)
        fan_in = in_channels * k * k
        bound = 1.0 / np.sqrt(fan_in)
        wgt = jax.random.uniform(k1, (c_out, in_channels, k, k), jnp.float32,
                                 -bound, bound)
        b = jax.random.uniform(k2, (c_out,), jnp.float32, -bound, bound)
        raw["convs"].append({"w": wgt, "b": b, "stride": s})
        in_channels = c_out
        h = (h - k) // s + 1
        w = (w - k) // s + 1
    flat_dim = in_channels * h * w
    key, k1, k2 = jax.random.split(key, 3)
    bound = 1.0 / np.sqrt(flat_dim)
    raw["fc_w"] = jax.random.uniform(k1, (cfg["hidden_size"], flat_dim),
                                     jnp.float32, -bound, bound)
    raw["fc_b"] = jax.random.uniform(k2, (cfg["hidden_size"],), jnp.float32,
                                     -bound, bound)
    return raw


def _conv_to_toeplitz(w, b, h_in, w_in, stride):
    """Exact dense lowering of a valid-padding Conv2d to a matmul acting on the
    NCHW-flattened per-sample activation:
        nchw_flat(conv(x)) == nchw_flat(x) @ T + bias_row."""
    c_out, c_in, k, _ = w.shape
    h_out = (h_in - k) // stride + 1
    w_out = (w_in - k) // stride + 1
    T = np.zeros((c_in * h_in * w_in, c_out * h_out * w_out), np.float32)
    co = np.arange(c_out)
    for i in range(h_out):
        for j in range(w_out):
            out_cols = (co * h_out + i) * w_out + j          # (c_out,)
            for kh in range(k):
                for kw in range(k):
                    hh, ww = i * stride + kh, j * stride + kw
                    for c in range(c_in):
                        in_row = (c * h_in + hh) * w_in + ww
                        T[in_row, out_cols] += w[:, c, kh, kw]
    bias_row = np.repeat(b, h_out * w_out).astype(np.float32)
    return T, bias_row, h_out, w_out


def build_fused_params(raw, input_shape):
    """Host-side, init-time lowering of conv1/conv2/fc to three bf16 matmul
    operands with biases folded in (ones-column augmentation), contraction dims
    padded to multiples of 16, and the final output padded to 128 lanes."""
    assert len(raw["convs"]) == 2, "fused kernel is written for 2 convs + fc"
    _, h, w = input_shape
    mats = []
    for conv in raw["convs"]:
        T, brow, h, w = _conv_to_toeplitz(np.asarray(conv["w"]),
                                          np.asarray(conv["b"]),
                                          h, w, conv["stride"])
        mats.append((T, brow))
    fc_w = np.asarray(raw["fc_w"], np.float32)            # (hidden, flat)
    fc_b = np.asarray(raw["fc_b"], np.float32)
    hidden = fc_w.shape[0]
    assert hidden <= LANE

    (T1, b1), (T2, b2) = mats
    d0, d1 = T1.shape                    # (C*H*W, c1*h1*w1)
    d1b, d2 = T2.shape                   # (c1*h1*w1, c2*h2*w2)
    assert d1b == d1 and fc_w.shape[1] == d2
    k1 = _round_up(d0 + 1, SUBPACK)      # +1 = ones column for the bias fold
    k2 = _round_up(d1 + 1, SUBPACK)
    k3 = _round_up(d2 + 1, SUBPACK)

    t1 = np.zeros((k1, k2), np.float32)
    t1[:d0, :d1] = T1
    t1[d0, :d1] = b1
    t1[d0, d1] = 1.0                     # carry the ones column to layer 2

    t2 = np.zeros((k2, k3), np.float32)
    t2[:d1, :d2] = T2
    t2[d1, :d2] = b2
    t2[d1, d2] = 1.0                     # carry the ones column to layer 3

    t3 = np.zeros((k3, LANE), np.float32)
    t3[:d2, :hidden] = fc_w.T
    t3[d2, :hidden] = fc_b

    # Scaling guard: T1 is O((C*H*W) x (c1*h1*w1)) and blows past VMEM at real
    # image sizes (v7x: 64 MiB physical).  This fused-Toeplitz formulation is
    # for toy inputs only; beyond this, use in-kernel im2col for conv1.
    assert t1.size * 2 < 16 * 1024 * 1024, t1.shape       # bf16 bytes

    return {"t1": jnp.asarray(t1, jnp.bfloat16),
            "t2": jnp.asarray(t2, jnp.bfloat16),
            "t3": jnp.asarray(t3, jnp.bfloat16)}


# --------------------------- pure-JAX reference ----------------------------- #

def reference_forward(raw, x):
    out = x
    for conv in raw["convs"]:
        out = jax.lax.conv_general_dilated(
            out, conv["w"], window_strides=(conv["stride"],) * 2,
            padding="VALID", dimension_numbers=("NCHW", "OIHW", "NCHW"))
        out = jnp.maximum(out + conv["b"][None, :, None, None], 0.0)
    flat = out.reshape(out.shape[0], -1)
    return jnp.maximum(flat @ raw["fc_w"].T + raw["fc_b"], 0.0)


# ----------------------------------- main ----------------------------------- #

if __name__ == "__main__":
    cfg_network = {
        "kernel_sizes": [3, 3],
        "layer_sizes": [8, 16],
        "stride_sizes": [2, 2],
        "hidden_size": 32,
        "activation": "relu",   # TODO(synk): only 'relu' implemented
        "layernorm": False,     # TODO(synk): LayerNorm branch not exercised
    }
    input_shape = (4, 16, 16)   # (C, H, W)
    batch = 2

    key = jax.random.PRNGKey(0)
    key, pkey, xkey = jax.random.split(key, 3)
    raw_params = _init_raw_params(pkey, input_shape, cfg_network)
    params = build_fused_params(raw_params, input_shape)
    x = jax.random.normal(xkey, (batch,) + input_shape, jnp.float32)  # NCHW

    out = cnn_forward(params, x, hidden_size=cfg_network["hidden_size"])
    out = jax.block_until_ready(out)

    assert out.shape == (batch, cfg_network["hidden_size"]), out.shape
    assert bool(jnp.all(jnp.isfinite(out)))
    ref = reference_forward(raw_params, x)
    assert bool(jnp.allclose(out, ref, rtol=5e-2, atol=5e-2)), \
        float(jnp.max(jnp.abs(out - ref)))
    print("KERNEL_OK")
</pallas_src>

<mosaic_0001>
module attributes {stable_mosaic.version = 11 : i64} {
  func.func @_fused_cnn_kernel(%arg0: i32, %arg1: memref<2x1040xbf16, #tpu.memory_space<vmem>>, %arg2: memref<1040x400xbf16, #tpu.memory_space<vmem>>, %arg3: memref<400x160xbf16, #tpu.memory_space<vmem>>, %arg4: memref<160x128xbf16, #tpu.memory_space<vmem>>, %arg5: memref<2x128xf32, #tpu.memory_space<vmem>>) attributes {dimension_semantics = [#tpu.dimension_semantics<parallel>], iteration_bounds = array<i64: 1>, scalar_prefetch = 0 : i64, scratch_operands = 0 : i64, tpu.core_type = #tpu.core_type<tc>, window_params = [{transform_indices = @transform_0, window_bounds = array<i64: 2, 1040>}, {pipeline_mode = #tpu.pipeline_mode<synchronous>, transform_indices = @transform_1, window_bounds = array<i64: 1040, 400>}, {pipeline_mode = #tpu.pipeline_mode<synchronous>, transform_indices = @transform_2, window_bounds = array<i64: 400, 160>}, {pipeline_mode = #tpu.pipeline_mode<synchronous>, transform_indices = @transform_3, window_bounds = array<i64: 160, 128>}, {transform_indices = @transform_4, window_bounds = array<i64: 2, 128>}]} {
    %c0 = arith.constant 0 : index
    %c0_0 = arith.constant 0 : index
    %0 = vector.load %arg1[%c0, %c0_0] : memref<2x1040xbf16, #tpu.memory_space<vmem>>, vector<2x1040xbf16>
    %c0_1 = arith.constant 0 : index
    %c0_2 = arith.constant 0 : index
    %1 = vector.load %arg2[%c0_1, %c0_2] : memref<1040x400xbf16, #tpu.memory_space<vmem>>, vector<1040x400xbf16>
    %cst = arith.constant dense<0.000000e+00> : vector<2x400xf32>
    %2 = tpu.matmul %0, %1, %cst {dimension_numbers = #tpu.dot_dimension_numbers<[1], [0], [0], [1], [0, 0, 1, 1], [], []>} : vector<2x1040xbf16>, vector<1040x400xbf16>, vector<2x400xf32> -> vector<2x400xf32>
    %cst_3 = arith.constant 0.000000e+00 : f32
    %3 = vector.broadcast %cst_3 : f32 to vector<2x400xf32>
    %4 = arith.maximumf %2, %3 : vector<2x400xf32>
    %5 = arith.truncf %4 : vector<2x400xf32> to vector<2x400xbf16>
    %c0_4 = arith.constant 0 : index
    %c0_5 = arith.constant 0 : index
    %6 = vector.load %arg3[%c0_4, %c0_5] : memref<400x160xbf16, #tpu.memory_space<vmem>>, vector<400x160xbf16>
    %cst_6 = arith.constant dense<0.000000e+00> : vector<2x160xf32>
    %7 = tpu.matmul %5, %6, %cst_6 {dimension_numbers = #tpu.dot_dimension_numbers<[1], [0], [0], [1], [0, 0, 1, 1], [], []>} : vector<2x400xbf16>, vector<400x160xbf16>, vector<2x160xf32> -> vector<2x160xf32>
    %cst_7 = arith.constant 0.000000e+00 : f32
    %8 = vector.broadcast %cst_7 : f32 to vector<2x160xf32>
    %9 = arith.maximumf %7, %8 : vector<2x160xf32>
    %10 = arith.truncf %9 : vector<2x160xf32> to vector<2x160xbf16>
    %c0_8 = arith.constant 0 : index
    %c0_9 = arith.constant 0 : index
    %11 = vector.load %arg4[%c0_8, %c0_9] : memref<160x128xbf16, #tpu.memory_space<vmem>>, vector<160x128xbf16>
    %cst_10 = arith.constant dense<0.000000e+00> : vector<2x128xf32>
    %12 = tpu.matmul %10, %11, %cst_10 {dimension_numbers = #tpu.dot_dimension_numbers<[1], [0], [0], [1], [0, 0, 1, 1], [], []>} : vector<2x160xbf16>, vector<160x128xbf16>, vector<2x128xf32> -> vector<2x128xf32>
    %cst_11 = arith.constant 0.000000e+00 : f32
    %13 = vector.broadcast %cst_11 : f32 to vector<2x128xf32>
    %14 = arith.maximumf %12, %13 : vector<2x128xf32>
    %c0_12 = arith.constant 0 : index
    %c0_13 = arith.constant 0 : index
    %15 = vector.load %arg5[%c0_12, %c0_13] : memref<2x128xf32, #tpu.memory_space<vmem>>, vector<2x128xf32>
    tpu.vector_store %arg5[%c0_12, %c0_13], %14 {strides = array<i32>} : memref<2x128xf32, #tpu.memory_space<vmem>>, vector<2x128xf32>,
    return
  }
  func.func @transform_0(%arg0: i32) -> (i32, i32) {
    %c0_i32 = arith.constant 0 : i32
    %c0_i32_0 = arith.constant 0 : i32
    return %arg0, %c0_i32 : i32, i32
  }
  func.func @transform_1(%arg0: i32) -> (i32, i32) {
    %c0_i32 = arith.constant 0 : i32
    %c0_i32_0 = arith.constant 0 : i32
    %c0_i32_1 = arith.constant 0 : i32
    return %c0_i32, %c0_i32_0 : i32, i32
  }
  func.func @transform_2(%arg0: i32) -> (i32, i32) {
    %c0_i32 = arith.constant 0 : i32
    %c0_i32_0 = arith.constant 0 : i32
    %c0_i32_1 = arith.constant 0 : i32
    return %c0_i32, %c0_i32_0 : i32, i32
  }
  func.func @transform_3(%arg0: i32) -> (i32, i32) {
    %c0_i32 = arith.constant 0 : i32
    %c0_i32_0 = arith.constant 0 : i32
    %c0_i32_1 = arith.constant 0 : i32
    return %c0_i32, %c0_i32_0 : i32, i32
  }
  func.func @transform_4(%arg0: i32) -> (i32, i32) {
    %c0_i32 = arith.constant 0 : i32
    %c0_i32_0 = arith.constant 0 : i32
    return %arg0, %c0_i32 : i32, i32
  }
}

</mosaic_0001>

<bundles_post_ra>
// kernel: cnn_forward.1
= control target key start
LH: loop header
LB: loop body
LE: loop exit
PB: predicated region body
PF: predicated region fallthrough
CT: control target
= control target key end

     0   :  { %v3431_v36 = vmov 1966171168   ;;  %v287_v38 = vlaneseq  ;;  %vm1654_vm0 = vcmask 130048   ;;  %s4502_s0 = inlined_call_operand.vmem [shape: bf16[2,1040], index: 0, kind: input, shape index: {}]   ;;  %s4503_s1 = inlined_call_operand.vmem [shape: bf16[1040,400], index: 1, kind: input, shape index: {}]   ;;  %s4504_s2 = inlined_call_operand.vmem [shape: bf16[400,160], index: 2, kind: input, shape index: {}]   ;;  %s4505_s3 = inlined_call_operand.vmem [shape: bf16[160,128], index: 3, kind: input, shape index: {}]   ;;  %s4506_s4 = inlined_call_operand.hbm [shape: f32[2,128], index: 4, kind: output, shape index: {}]  }
   0x1   :  { %v2933_v0 = vld [vmem:[%s4503_s1 + $0xe4] ss:$16 sps:$4 sm:$0xff]   ;;  %v2937_v2 = vld [vmem:[%s4503_s1 + $0xe0] ss:$16 sps:$4 sm:$0xff]   ;;  %v285_v37 = vunpack.c.l.s4 %v3431_v36 }
   0x2   :  { %v2935_v1 = vld [vmem:[%s4503_s1 + $0x2e4] ss:$16 sps:$4 sm:$0xff]   ;;  %1658 = vmatprep.subr.bf16.mxu0 %v2933_v0  ;;  %v2938_v3 = vld [vmem:[%s4503_s1 + $0x2e0] ss:$16 sps:$4 sm:$0xff]   ;;  %v288_v43 = vshrl.u32 %v287_v38, 7 }
   0x3   :  { %1699 = vmatprep.subr.bf16.mxu1 %v2935_v1  ;;  %v2939_v4 = vld [vmem:[%s4503_s1 + $0xc4] ss:$16 sps:$4 sm:$0xff]   ;;  %1659 = vmatpush1.bf16.msra.mxu0 %v2937_v2  ;;  %v2943_v6 = vld [vmem:[%s4503_s1 + $0xc0] ss:$16 sps:$4 sm:$0xff]   ;;  %v286_v42 = vunpack.c.0.s8 %v285_v37 }
   0x4   :  { %1700 = vmatpush1.bf16.msra.mxu1 %v2938_v3  ;;  %v2941_v5 = vld [vmem:[%s4503_s1 + $0x2c4] ss:$16 sps:$4 sm:$0xff]   ;;  %1660 = vmatprep.subr.bf16.mxu0 %v2939_v4  ;;  %v2944_v7 = vld [vmem:[%s4503_s1 + $0x2c0] ss:$16 sps:$4 sm:$0xff]  }
   0x5   :  { %1701 = vmatprep.subr.bf16.mxu1 %v2941_v5  ;;  %v2945_v8 = vld [vmem:[%s4503_s1 + $0xa4] ss:$16 sps:$4 sm:$0xff]   ;;  %v2949_v10 = vld [vmem:[%s4503_s1 + $0xa0] ss:$16 sps:$4 sm:$0xff]   ;;  %v3591_v49 = vsub.s32 %v286_v42, %v288_v43 }
   0x6   :  { %v2947_v9 = vld [vmem:[%s4503_s1 + $0x2a4] ss:$16 sps:$4 sm:$0xff]   ;;  %v2950_v11 = vld [vmem:[%s4503_s1 + $0x2a0] ss:$16 sps:$4 sm:$0xff]  }
   0x7   :  { %1661 = vmatpush1.bf16.msra.mxu0 %v2943_v6  ;;  %v2951_v12 = vld [vmem:[%s4503_s1 + $0x84] ss:$16 sps:$4 sm:$0xff]   ;;  %v2955_v14 = vld [vmem:[%s4503_s1 + $0x80] ss:$16 sps:$4 sm:$0xff]  }
   0x8   :  { %1702 = vmatpush1.bf16.msra.mxu1 %v2944_v7  ;;  %1662 = vmatprep.subr.bf16.mxu0 %v2945_v8  ;;  %v2953_v13 = vld [vmem:[%s4503_s1 + $0x284] ss:$16 sps:$4 sm:$0xff]   ;;  %v2956_v15 = vld [vmem:[%s4503_s1 + $0x280] ss:$16 sps:$4 sm:$0xff]  }
   0x9   :  { %1703 = vmatprep.subr.bf16.mxu1 %v2947_v9  ;;  %v2957_v16 = vld [vmem:[%s4503_s1 + $0x64] ss:$16 sps:$4 sm:$0xff]   ;;  %v2961_v18 = vld [vmem:[%s4503_s1 + $0x60] ss:$16 sps:$4 sm:$0xff]  }
   0xa   :  { %v2959_v17 = vld [vmem:[%s4503_s1 + $0x264] ss:$16 sps:$4 sm:$0xff]   ;;  %v2962_v19 = vld [vmem:[%s4503_s1 + $0x260] ss:$16 sps:$4 sm:$0xff]  }
   0xb   :  { %1663 = vmatpush1.bf16.msra.mxu0 %v2949_v10  ;;  %v2963_v20 = vld [vmem:[%s4503_s1 + $0x44] ss:$16 sps:$4 sm:$0xff]   ;;  %v2967_v22 = vld [vmem:[%s4503_s1 + $0x40] ss:$16 sps:$4 sm:$0xff]  }
   0xc   :  { %1704 = vmatpush1.bf16.msra.mxu1 %v2950_v11  ;;  %1664 = vmatprep.subr.bf16.mxu0 %v2951_v12  ;;  %v2965_v21 = vld [vmem:[%s4503_s1 + $0x244] ss:$16 sps:$4 sm:$0xff]   ;;  %v2968_v23 = vld [vmem:[%s4503_s1 + $0x240] ss:$16 sps:$4 sm:$0xff]  }
   0xd   :  { %1705 = vmatprep.subr.bf16.mxu1 %v2953_v13  ;;  %v2969_v24 = vld [vmem:[%s4503_s1 + $0x24] ss:$16 sps:$4 sm:$0xff]   ;;  %v2973_v26 = vld [vmem:[%s4503_s1 + $0x20] ss:$16 sps:$4 sm:$0xff]  }
   0xe   :  { %v2971_v25 = vld [vmem:[%s4503_s1 + $0x224] ss:$16 sps:$4 sm:$0xff]   ;;  %v2974_v27 = vld [vmem:[%s4503_s1 + $0x220] ss:$16 sps:$4 sm:$0xff]  }
   0xf   :  { %1665 = vmatpush1.bf16.msra.mxu0 %v2955_v14  ;;  %v2975_v28 = vld [vmem:[%s4503_s1 + $0x4] ss:$16 sps:$4 sm:$0xff]   ;;  %v2979_v30 = vld [vmem:[%s4503_s1] ss:$16 sps:$4 sm:$0xff]  }
  0x10   :  { %1706 = vmatpush1.bf16.msra.mxu1 %v2956_v15  ;;  %1666 = vmatprep.subr.bf16.mxu0 %v2957_v16  ;;  %v2977_v29 = vld [vmem:[%s4503_s1 + $0x204] ss:$16 sps:$4 sm:$0xff]   ;;  %v2980_v31 = vld [vmem:[%s4503_s1 + $0x200] ss:$16 sps:$4 sm:$0xff]  }
  0x11   :  { %1707 = vmatprep.subr.bf16.mxu1 %v2959_v17  ;;  %v2981_v32 = vld [vmem:[%s4503_s1 + $0x1e4] ss:$16 sps:$4 sm:$0xff]   ;;  %v2985_v34 = vld [vmem:[%s4503_s1 + $0x1e0] ss:$16 sps:$4 sm:$0xff]  }
  0x12   :  { %v2983_v33 = vld [vmem:[%s4503_s1 + $0x3e4] ss:$16 sps:$4 sm:$0xff]   ;;  %v2986_v35 = vld [vmem:[%s4503_s1 + $0x3e0] ss:$16 sps:$4 sm:$0xff]  }
  0x13   :  { %1667 = vmatpush1.bf16.msra.mxu0 %v2961_v18  ;;  %v2987_v39 = vld [vmem:[%s4503_s1 + $0x1c4] ss:$16 sps:$4 sm:$0xff]   ;;  %v2991_v41 = vld [vmem:[%s4503_s1 + $0x1c0] ss:$16 sps:$4 sm:$0xff]  }
  0x14   :  { %1708 = vmatpush1.bf16.msra.mxu1 %v2962_v19  ;;  %1668 = vmatprep.subr.bf16.mxu0 %v2963_v20  ;;  %v2989_v40 = vld [vmem:[%s4503_s1 + $0x3c4] ss:$16 sps:$4 sm:$0xff]   ;;  %v2992_v44 = vld [vmem:[%s4503_s1 + $0x3c0] ss:$16 sps:$4 sm:$0xff]  }
  0x15   :  { %1709 = vmatprep.subr.bf16.mxu1 %v2965_v21  ;;  %v2993_v45 = vld [vmem:[%s4503_s1 + $0x1a4] ss:$16 sps:$4 sm:$0xff]   ;;  %v2997_v47 = vld [vmem:[%s4503_s1 + $0x1a0] ss:$16 sps:$4 sm:$0xff]  }
  0x16   :  { %v2995_v46 = vld [vmem:[%s4503_s1 + $0x3a4] ss:$16 sps:$4 sm:$0xff]   ;;  %v2998_v48 = vld [vmem:[%s4503_s1 + $0x3a0] ss:$16 sps:$4 sm:$0xff]  }
  0x17   :  { %1669 = vmatpush1.bf16.msra.mxu0 %v2967_v22  ;;  %v2999_v50 = vld [vmem:[%s4503_s1 + $0x184] ss:$16 sps:$4 sm:$0xff]   ;;  %v3003_v53 = vld [vmem:[%s4503_s1 + $0x180] ss:$16 sps:$4 sm:$0xff]  }
  0x18   :  { %1710 = vmatpush1.bf16.msra.mxu1 %v2968_v23  ;;  %1670 = vmatprep.subr.bf16.mxu0 %v2969_v24  ;;  %v3001_v51 = vld [vmem:[%s4503_s1 + $0x384] ss:$16 sps:$4 sm:$0xff]   ;;  %v3004_v56 = vld [vmem:[%s4503_s1 + $0x380] ss:$16 sps:$4 sm:$0xff]  }
  0x19   :  { %1711 = vmatprep.subr.bf16.mxu1 %v2971_v25  ;;  %v19_v52 = vld [vmem:[%s4502_s0] sm:$0xff] }
  0x1a   :  { %v290_v54 = vrot.slane %v19_v52, %v3591_v49  ;;  %v283_v55 = vcombine.high %v19_v52, %v19_v52  ;;  %v3005_v57 = vld [vmem:[%s4503_s1 + $0x164] ss:$16 sps:$4 sm:$0xff]   ;;  %v3009_v61 = vld [vmem:[%s4503_s1 + $0x160] ss:$16 sps:$4 sm:$0xff]  }
  0x1b   :  { %1671 = vmatpush1.bf16.msra.mxu0 %v2973_v26  ;;  %v3007_v58 = vld [vmem:[%s4503_s1 + $0x364] ss:$16 sps:$4 sm:$0xff]   ;;  %v3010_v0 = vld [vmem:[%s4503_s1 + $0x360] ss:$16 sps:$4 sm:$0xff]  }
  0x1c   :  { %1712 = vmatpush1.bf16.msra.mxu1 %v2974_v27  ;;  %1672 = vmatprep.subr.bf16.mxu0 %v2975_v28  ;;  %v298_v59 = vcombine.high %v290_v54, %v290_v54  ;;  %v297_v60 = vrot.slane %v283_v55, %v3591_v49  ;;  %v3011_v1 = vld [vmem:[%s4503_s1 + $0x144] ss:$16 sps:$4 sm:$0xff]   ;;  %v3015_v4 = vld [vmem:[%s4503_s1 + $0x140] ss:$16 sps:$4 sm:$0xff]   ;;  %v3668_v14 = vrot.slane %v290_v54, %v3591_v49 }
  0x1d   :  { %1713 = vmatprep.subr.bf16.mxu1 %v2977_v29  ;;  %v3013_v2 = vld [vmem:[%s4503_s1 + $0x344] ss:$16 sps:$4 sm:$0xff]   ;;  %v3016_v5 = vld [vmem:[%s4503_s1 + $0x340] ss:$16 sps:$4 sm:$0xff]  }
  0x1e   :  { %v3620_v62 = vrot.slane %v298_v59, %v3591_v49  ;;  %v3623_v63 = vrot.slane %v297_v60, %v3591_v49  ;;  %v3017_v6 = vld [vmem:[%s4503_s1 + $0x124] ss:$16 sps:$4 sm:$0xff]   ;;  %v3021_v8 = vld [vmem:[%s4503_s1 + $0x120] ss:$16 sps:$4 sm:$0xff]   ;;  %v299_v12 = vcombine.high %v297_v60, %v297_v60  ;;  %v3684_v19 = vcombine.high %v3668_v14, %v3668_v14 }
  0x1f   :  { %1673 = vmatpush1.bf16.msra.mxu0 %v2979_v30  ;;  %v3019_v7 = vld [vmem:[%s4503_s1 + $0x324] ss:$16 sps:$4 sm:$0xff]   ;;  %v3022_v9 = vld [vmem:[%s4503_s1 + $0x320] ss:$16 sps:$4 sm:$0xff]  }
  0x20   :  { %1714 = vmatpush1.bf16.msra.mxu1 %v2980_v31  ;;  %1674 = vmatprep.subr.bf16.mxu0 %v2981_v32  ;;  %v3636_v3 = vcombine.high %v3620_v62, %v3620_v62  ;;  %v3023_v10 = vld [vmem:[%s4503_s1 + $0x104] ss:$16 sps:$4 sm:$0xff]   ;;  %v3027_v13 = vld [vmem:[%s4503_s1 + $0x100] ss:$16 sps:$4 sm:$0xff]   ;;  %v3680_v18 = vrot.slane %v299_v12, %v3591_v49 }
  0x21   :  { %1715 = vmatprep.subr.bf16.mxu1 %v2983_v33  ;;  %1690 = vmatprep.mubr.bf16.mxu0 %v3620_v62  ;;  %v3025_v11 = vld [vmem:[%s4503_s1 + $0x304] ss:$16 sps:$4 sm:$0xff]   ;;  %v3028_v15 = vld [vmem:[%s4503_s1 + $0x300] ss:$16 sps:$4 sm:$0xff]  }
  0x22   :  { %1731 = vmatprep.mubr.bf16.mxu1 %v3636_v3  ;;  %v3031_v16 = vld [vmem:[%s4503_s1 + $0x4e4] ss:$16 sps:$4 sm:$0xff]   ;;  %v3029_v20 = vld [vmem:[%s4503_s1 + $0x4e0] ss:$16 sps:$4 sm:$0xff]   ;;  %v3700_v24 = vcombine.high %v3680_v18, %v3680_v18 }
  0x23   :  { %1675 = vmatpush2.bf16.msra.mxu0 %v2985_v34  ;;  %v3034_v17 = vld [vmem:[%s4503_s1 + $0x6e4] ss:$16 sps:$4 sm:$0xff]   ;;  %v3032_v21 = vld [vmem:[%s4503_s1 + $0x6e0] ss:$16 sps:$4 sm:$0xff]  }
  0x24   :  { %1716 = vmatpush2.bf16.msra.mxu1 %v2986_v35  ;;  %1676 = vmatprep.subr.bf16.mxu0 %v2987_v39  ;;  %v3037_v22 = vld [vmem:[%s4503_s1 + $0x4c4] ss:$16 sps:$4 sm:$0xff]   ;;  %v3035_v25 = vld [vmem:[%s4503_s1 + $0x4c0] ss:$16 sps:$4 sm:$0xff]  }
  0x25   :  { %1717 = vmatprep.subr.bf16.mxu1 %v2989_v40  ;;  %v3040_v23 = vld [vmem:[%s4503_s1 + $0x6c4] ss:$16 sps:$4 sm:$0xff]   ;;  %v3038_v26 = vld [vmem:[%s4503_s1 + $0x6c0] ss:$16 sps:$4 sm:$0xff]  }
  0x26   :  { %v3043_v27 = vld [vmem:[%s4503_s1 + $0x4a4] ss:$16 sps:$4 sm:$0xff]   ;;  %v3041_v29 = vld [vmem:[%s4503_s1 + $0x4a0] ss:$16 sps:$4 sm:$0xff]  }
  0x27   :  { %1677 = vmatpush2.bf16.msra.mxu0 %v2991_v41  ;;  %v3046_v28 = vld [vmem:[%s4503_s1 + $0x6a4] ss:$16 sps:$4 sm:$0xff]   ;;  %v3044_v30 = vld [vmem:[%s4503_s1 + $0x6a0] ss:$16 sps:$4 sm:$0xff]  }
  0x28   :  { %1718 = vmatpush2.bf16.msra.mxu1 %v2992_v44  ;;  %1678 = vmatprep.subr.bf16.mxu0 %v2993_v45  ;;  %v3049_v31 = vld [vmem:[%s4503_s1 + $0x484] ss:$16 sps:$4 sm:$0xff]   ;;  %v3047_v33 = vld [vmem:[%s4503_s1 + $0x480] ss:$16 sps:$4 sm:$0xff]  }
  0x29   :  { %1719 = vmatprep.subr.bf16.mxu1 %v2995_v46  ;;  %v3052_v32 = vld [vmem:[%s4503_s1 + $0x684] ss:$16 sps:$4 sm:$0xff]   ;;  %v3050_v34 = vld [vmem:[%s4503_s1 + $0x680] ss:$16 sps:$4 sm:$0xff]  }
  0x2a   :  { %v3055_v35 = vld [vmem:[%s4503_s1 + $0x464] ss:$16 sps:$4 sm:$0xff]   ;;  %v3053_v37 = vld [vmem:[%s4503_s1 + $0x460] ss:$16 sps:$4 sm:$0xff]  }
  0x2b   :  { %1679 = vmatpush2.bf16.msra.mxu0 %v2997_v47  ;;  %v3058_v36 = vld [vmem:[%s4503_s1 + $0x664] ss:$16 sps:$4 sm:$0xff]   ;;  %v3056_v38 = vld [vmem:[%s4503_s1 + $0x660] ss:$16 sps:$4 sm:$0xff]  }
  0x2c   :  { %1720 = vmatpush2.bf16.msra.mxu1 %v2998_v48  ;;  %1680 = vmatprep.subr.bf16.mxu0 %v2999_v50  ;;  %v3061_v39 = vld [vmem:[%s4503_s1 + $0x444] ss:$16 sps:$4 sm:$0xff]   ;;  %v3059_v41 = vld [vmem:[%s4503_s1 + $0x440] ss:$16 sps:$4 sm:$0xff]  }
  0x2d   :  { %1721 = vmatprep.subr.bf16.mxu1 %v3001_v51  ;;  %v3064_v40 = vld [vmem:[%s4503_s1 + $0x644] ss:$16 sps:$4 sm:$0xff]   ;;  %v3062_v42 = vld [vmem:[%s4503_s1 + $0x640] ss:$16 sps:$4 sm:$0xff]  }
  0x2e   :  { %v3067_v43 = vld [vmem:[%s4503_s1 + $0x424] ss:$16 sps:$4 sm:$0xff]   ;;  %v3065_v45 = vld [vmem:[%s4503_s1 + $0x420] ss:$16 sps:$4 sm:$0xff]  }
  0x2f   :  { %1681 = vmatpush2.bf16.msra.mxu0 %v3003_v53  ;;  %v3070_v44 = vld [vmem:[%s4503_s1 + $0x624] ss:$16 sps:$4 sm:$0xff]   ;;  %v3068_v46 = vld [vmem:[%s4503_s1 + $0x620] ss:$16 sps:$4 sm:$0xff]  }
  0x30   :  { %1722 = vmatpush2.bf16.msra.mxu1 %v3004_v56  ;;  %1682 = vmatprep.subr.bf16.mxu0 %v3005_v57  ;;  %v3073_v47 = vld [vmem:[%s4503_s1 + $0x404] ss:$16 sps:$4 sm:$0xff]   ;;  %v3071_v50 = vld [vmem:[%s4503_s1 + $0x400] ss:$16 sps:$4 sm:$0xff]  }
  0x31   :  { %1723 = vmatprep.subr.bf16.mxu1 %v3007_v58  ;;  %v3076_v48 = vld [vmem:[%s4503_s1 + $0x604] ss:$16 sps:$4 sm:$0xff]   ;;  %v3074_v51 = vld [vmem:[%s4503_s1 + $0x600] ss:$16 sps:$4 sm:$0xff]  }
  0x32   :  { %v3079_v52 = vld [vmem:[%s4503_s1 + $0x5e4] ss:$16 sps:$4 sm:$0xff]   ;;  %v3077_v54 = vld [vmem:[%s4503_s1 + $0x5e0] ss:$16 sps:$4 sm:$0xff]  }
  0x33   :  { %1683 = vmatpush2.bf16.msra.mxu0 %v3009_v61  ;;  %v3082_v53 = vld [vmem:[%s4503_s1 + $0x7e4] ss:$16 sps:$4 sm:$0xff]   ;;  %v3080_v55 = vld [vmem:[%s4503_s1 + $0x7e0] ss:$16 sps:$4 sm:$0xff]  }
  0x34   :  { %1724 = vmatpush2.bf16.msra.mxu1 %v3010_v0  ;;  %1684 = vmatprep.subr.bf16.mxu0 %v3011_v1  ;;  %v3085_v56 = vld [vmem:[%s4503_s1 + $0x5c4] ss:$16 sps:$4 sm:$0xff]   ;;  %v3083_v58 = vld [vmem:[%s4503_s1 + $0x5c0] ss:$16 sps:$4 sm:$0xff]  }
  0x35   :  { %1725 = vmatprep.subr.bf16.mxu1 %v3013_v2  ;;  %v3088_v57 = vld [vmem:[%s4503_s1 + $0x7c4] ss:$16 sps:$4 sm:$0xff]   ;;  %v3086_v59 = vld [vmem:[%s4503_s1 + $0x7c0] ss:$16 sps:$4 sm:$0xff]  }
  0x36   :  { %v3091_v60 = vld [vmem:[%s4503_s1 + $0x5a4] ss:$16 sps:$4 sm:$0xff]   ;;  %v3089_v0 = vld [vmem:[%s4503_s1 + $0x5a0] ss:$16 sps:$4 sm:$0xff]  }
  0x37   :  { %1685 = vmatpush2.bf16.msra.mxu0 %v3015_v4  ;;  %v3094_v61 = vld [vmem:[%s4503_s1 + $0x7a4] ss:$16 sps:$4 sm:$0xff]   ;;  %v3092_v1 = vld [vmem:[%s4503_s1 + $0x7a0] ss:$16 sps:$4 sm:$0xff]  }
  0x38   :  { %1726 = vmatpush2.bf16.msra.mxu1 %v3016_v5  ;;  %1686 = vmatprep.subr.bf16.mxu0 %v3017_v6  ;;  %v3097_v2 = vld [vmem:[%s4503_s1 + $0x584] ss:$16 sps:$4 sm:$0xff]   ;;  %v3095_v5 = vld [vmem:[%s4503_s1 + $0x580] ss:$16 sps:$4 sm:$0xff]  }
  0x39   :  { %1727 = vmatprep.subr.bf16.mxu1 %v3019_v7  ;;  %v3100_v4 = vld [vmem:[%s4503_s1 + $0x784] ss:$16 sps:$4 sm:$0xff]   ;;  %v3098_v6 = vld [vmem:[%s4503_s1 + $0x780] ss:$16 sps:$4 sm:$0xff]  }
  0x3a   :  { %v3103_v7 = vld [vmem:[%s4503_s1 + $0x564] ss:$16 sps:$4 sm:$0xff]  }
  0x3b   :  { %1687 = vmatpush2.bf16.msra.mxu0 %v3021_v8  ;;  %v3106_v8 = vld [vmem:[%s4503_s1 + $0x764] ss:$16 sps:$4 sm:$0xff]  }
  0x3c   :  { %1728 = vmatpush2.bf16.msra.mxu1 %v3022_v9  ;;  %1688 = vmatprep.subr.bf16.mxu0 %v3023_v10  ;;  %v3101_v9 = vld [vmem:[%s4503_s1 + $0x560] ss:$16 sps:$4 sm:$0xff]   ;;  %v3112_v12 = vld [vmem:[%s4503_s1 + $0x744] ss:$16 sps:$4 sm:$0xff]  }
  0x3d   :  { %1729 = vmatprep.subr.bf16.mxu1 %v3025_v11  ;;  %v3104_v10 = vld [vmem:[%s4503_s1 + $0x760] ss:$16 sps:$4 sm:$0xff]   ;;  %v3109_v11 = vld [vmem:[%s4503_s1 + $0x544] ss:$16 sps:$4 sm:$0xff]  }
  0x3f   :  { %1689 = vmatpush2.bf16.msra.mxu0 %v3027_v13  ;;  %v3107_v13 = vld [vmem:[%s4503_s1 + $0x540] ss:$16 sps:$4 sm:$0xff]  }
  0x40   :  { %1730 = vmatpush2.bf16.msra.mxu1 %v3028_v15  ;;  %1740 = vmatprep.subr.bf16.mxu0 %v3031_v16  ;;  %v3110_v15 = vld [vmem:[%s4503_s1 + $0x740] ss:$16 sps:$4 sm:$0xff]   ;;  %v3115_v16 = vld [vmem:[%s4503_s1 + $0x524] ss:$16 sps:$4 sm:$0xff]  }
  0x41   :  { %1781 = vmatprep.subr.bf16.mxu1 %v3034_v17  ;;  %v3118_v17 = vld [vmem:[%s4503_s1 + $0x724] ss:$16 sps:$4 sm:$0xff]  }
  0x42   :  { %1691 = vmatmul.mubr.bf16.vlgmr.msra.gmra.mxu0 %v3668_v14 }
  0x43   :  { %1732 = vmatmul.mubr.bf16.vlgmr.msra.gmra.mxu1 %v3684_v19  ;;  %1741 = vmatpush1.bf16.msra.mxu0 %v3029_v20  ;;  %v3113_v20 = vld [vmem:[%s4503_s1 + $0x520] ss:$16 sps:$4 sm:$0xff]  }
  0x44   :  { %1782 = vmatpush1.bf16.msra.mxu1 %v3032_v21  ;;  %1742 = vmatprep.subr.bf16.mxu0 %v3037_v22  ;;  %v3116_v21 = vld [vmem:[%s4503_s1 + $0x720] ss:$16 sps:$4 sm:$0xff]   ;;  %v3121_v22 = vld [vmem:[%s4503_s1 + $0x504] ss:$16 sps:$4 sm:$0xff]  }
  0x45   :  { %1783 = vmatprep.subr.bf16.mxu1 %v3040_v23  ;;  %1772 = vmatprep.mubr.bf16.mxu0 %v3680_v18  ;;  %v3124_v23 = vld [vmem:[%s4503_s1 + $0x704] ss:$16 sps:$4 sm:$0xff]  }
  0x46   :  { %1813 = vmatprep.mubr.bf16.mxu1 %v3700_v24 }
  0x47   :  { %1743 = vmatpush1.bf16.msra.mxu0 %v3035_v25  ;;  %v3119_v25 = vld [vmem:[%s4503_s1 + $0x500] ss:$16 sps:$4 sm:$0xff]  }
  0x48   :  { %1784 = vmatpush1.bf16.msra.mxu1 %v3038_v26  ;;  %1744 = vmatprep.subr.bf16.mxu0 %v3043_v27  ;;  %v3122_v26 = vld [vmem:[%s4503_s1 + $0x700] ss:$16 sps:$4 sm:$0xff]   ;;  %v3128_v27 = vld [vmem:[%s4503_s1 + $0x804] ss:$16 sps:$4 sm:$0xff]  }
  0x49   :  { %1785 = vmatprep.subr.bf16.mxu1 %v3046_v28  ;;  %v3131_v28 = vld [vmem:[%s4503_s1 + $0xec] ss:$16 sps:$4 sm:$0xff]  }
  0x4b   :  { %1745 = vmatpush1.bf16.msra.mxu0 %v3041_v29  ;;  %v3888_v29 = vcombine.high %v3623_v63, %v3623_v63 }
  0x4c   :  { %1786 = vmatpush1.bf16.msra.mxu1 %v3044_v30  ;;  %1746 = vmatprep.subr.bf16.mxu0 %v3049_v31  ;;  %v3126_v30 = vld [vmem:[%s4503_s1 + $0x800] ss:$16 sps:$4 sm:$0xff]   ;;  %v3129_v31 = vld [vmem:[%s4503_s1 + $0xe8] ss:$16 sps:$4 sm:$0xff]  }
  0x4d   :  { %1787 = vmatprep.subr.bf16.mxu1 %v3052_v32  ;;  %v3134_v32 = vld [vmem:[%s4503_s1 + $0xcc] ss:$16 sps:$4 sm:$0xff]  }
  0x4f   :  { %1747 = vmatpush1.bf16.msra.mxu0 %v3047_v33  ;;  %v3137_v33 = vld [vmem:[%s4503_s1 + $0x2ec] ss:$16 sps:$4 sm:$0xff]  }
  0x50   :  { %1788 = vmatpush1.bf16.msra.mxu1 %v3050_v34  ;;  %1748 = vmatprep.subr.bf16.mxu0 %v3055_v35  ;;  %v3132_v34 = vld [vmem:[%s4503_s1 + $0xc8] ss:$16 sps:$4 sm:$0xff]  }
  0x51   :  { %1789 = vmatprep.subr.bf16.mxu1 %v3058_v36  ;;  %v2605_v35 = vld.sshfl [vmem:[%s4502_s0 + $0x8] sm:$0x1 pattern:$0x75316420]  ;;  %v3432_v36 = vmov 0  }
  0x53   :  { %1749 = vmatpush1.bf16.msra.mxu0 %v3053_v37  ;;  %v3140_v37 = vld [vmem:[%s4503_s1 + $0xac] ss:$16 sps:$4 sm:$0xff]  }
  0x54   :  { %1790 = vmatpush1.bf16.msra.mxu1 %v3056_v38  ;;  %1750 = vmatprep.subr.bf16.mxu0 %v3061_v39  ;;  %v3916_v38 = vrot.slane %v2605_v35, %v3591_v49  ;;  %v3135_v39 = vld [vmem:[%s4503_s1 + $0x2e8] ss:$16 sps:$4 sm:$0xff]   ;;  %v3146_v49 = vld [vmem:[%s4503_s1 + $0x8c] ss:$16 sps:$4 sm:$0xff]  }
  0x55   :  { %1791 = vmatprep.subr.bf16.mxu1 %v3064_v40  ;;  %v3138_v40 = vld [vmem:[%s4503_s1 + $0xa8] ss:$16 sps:$4 sm:$0xff]   ;;  %v3221_v35 = vld [vmem:[%s4503_s1 + $0x32c] ss:$16 sps:$4 sm:$0xff]  }
  0x57   :  { %1751 = vmatpush1.bf16.msra.mxu0 %v3059_v41  ;;  %v3143_v41 = vld [vmem:[%s4503_s1 + $0x2cc] ss:$16 sps:$4 sm:$0xff]  }
  0x58   :  { %1792 = vmatpush1.bf16.msra.mxu1 %v3062_v42  ;;  %1752 = vmatprep.subr.bf16.mxu0 %v3067_v43  ;;  %v3144_v42 = vld [vmem:[%s4503_s1 + $0x88] ss:$16 sps:$4 sm:$0xff]   ;;  %v3149_v43 = vld [vmem:[%s4503_s1 + $0x2ac] ss:$16 sps:$4 sm:$0xff]  }
  0x59   :  { %1793 = vmatprep.subr.bf16.mxu1 %v3070_v44  ;;  %v3152_v44 = vld [vmem:[%s4503_s1 + $0x6c] ss:$16 sps:$4 sm:$0xff]  }
  0x5b   :  { %1753 = vmatpush1.bf16.msra.mxu0 %v3065_v45  ;;  %v3147_v45 = vld [vmem:[%s4503_s1 + $0x2a8] ss:$16 sps:$4 sm:$0xff]  }
  0x5c   :  { %1794 = vmatpush1.bf16.msra.mxu1 %v3068_v46  ;;  %1754 = vmatprep.subr.bf16.mxu0 %v3073_v47  ;;  %v3150_v46 = vld [vmem:[%s4503_s1 + $0x68] ss:$16 sps:$4 sm:$0xff]   ;;  %v3155_v47 = vld [vmem:[%s4503_s1 + $0x28c] ss:$16 sps:$4 sm:$0xff]  }
  0x5d   :  { %1795 = vmatprep.subr.bf16.mxu1 %v3076_v48  ;;  %v3153_v48 = vld [vmem:[%s4503_s1 + $0x288] ss:$16 sps:$4 sm:$0xff]  }
  0x5f   :  { %1755 = vmatpush1.bf16.msra.mxu0 %v3071_v50  ;;  %v3156_v50 = vld [vmem:[%s4503_s1 + $0x48] ss:$16 sps:$4 sm:$0xff]  }
  0x60   :  { %1796 = vmatpush1.bf16.msra.mxu1 %v3074_v51  ;;  %1756 = vmatprep.subr.bf16.mxu0 %v3079_v52  ;;  %v3161_v51 = vld [vmem:[%s4503_s1 + $0x26c] ss:$16 sps:$4 sm:$0xff]  }
  0x61   :  { %1797 = vmatprep.subr.bf16.mxu1 %v3082_v53  ;;  %v3164_v52 = vld [vmem:[%s4503_s1 + $0x2c] ss:$16 sps:$4 sm:$0xff]   ;;  %v3159_v53 = vld [vmem:[%s4503_s1 + $0x268] ss:$16 sps:$4 sm:$0xff]  }
  0x63   :  { %1757 = vmatpush2.bf16.msra.mxu0 %v3077_v54  ;;  %v3162_v54 = vld [vmem:[%s4503_s1 + $0x28] ss:$16 sps:$4 sm:$0xff]  }
  0x64   :  { %1798 = vmatpush2.bf16.msra.mxu1 %v3080_v55  ;;  %1758 = vmatprep.subr.bf16.mxu0 %v3085_v56  ;;  %v3167_v55 = vld [vmem:[%s4503_s1 + $0x24c] ss:$16 sps:$4 sm:$0xff]  }
  0x65   :  { %1799 = vmatprep.subr.bf16.mxu1 %v3088_v57  ;;  %v3170_v56 = vld [vmem:[%s4503_s1 + $0xc] ss:$16 sps:$4 sm:$0xff]   ;;  %v3165_v57 = vld [vmem:[%s4503_s1 + $0x248] ss:$16 sps:$4 sm:$0xff]  }
  0x67   :  { %1759 = vmatpush2.bf16.msra.mxu0 %v3083_v58  ;;  %v3168_v58 = vld [vmem:[%s4503_s1 + $0x8] ss:$16 sps:$4 sm:$0xff]  }
  0x68   :  { %1800 = vmatpush2.bf16.msra.mxu1 %v3086_v59  ;;  %1760 = vmatprep.subr.bf16.mxu0 %v3091_v60  ;;  %v3173_v59 = vld [vmem:[%s4503_s1 + $0x22c] ss:$16 sps:$4 sm:$0xff]  }
  0x69   :  { %1801 = vmatprep.subr.bf16.mxu1 %v3094_v61  ;;  %v3176_v60 = vld [vmem:[%s4503_s1 + $0x1ec] ss:$16 sps:$4 sm:$0xff]   ;;  %v3171_v61 = vld [vmem:[%s4503_s1 + $0x228] ss:$16 sps:$4 sm:$0xff]  }
  0x6b   :  { %1761 = vmatpush2.bf16.msra.mxu0 %v3089_v0  ;;  %v3174_v0 = vld [vmem:[%s4503_s1 + $0x1e8] ss:$16 sps:$4 sm:$0xff]  }
  0x6c   :  { %1802 = vmatpush2.bf16.msra.mxu1 %v3092_v1  ;;  %1762 = vmatprep.subr.bf16.mxu0 %v3097_v2  ;;  %v3179_v1 = vld [vmem:[%s4503_s1 + $0x20c] ss:$16 sps:$4 sm:$0xff]  }
  0x6d   :  { %1803 = vmatprep.subr.bf16.mxu1 %v3100_v4  ;;  %v3182_v2 = vld [vmem:[%s4503_s1 + $0x1cc] ss:$16 sps:$4 sm:$0xff]   ;;  %v3177_v4 = vld [vmem:[%s4503_s1 + $0x208] ss:$16 sps:$4 sm:$0xff]  }
  0x6f   :  { %1763 = vmatpush2.bf16.msra.mxu0 %v3095_v5  ;;  %v3180_v5 = vld [vmem:[%s4503_s1 + $0x1c8] ss:$16 sps:$4 sm:$0xff]  }
  0x70   :  { %1804 = vmatpush2.bf16.msra.mxu1 %v3098_v6  ;;  %1764 = vmatprep.subr.bf16.mxu0 %v3103_v7  ;;  %v3185_v6 = vld [vmem:[%s4503_s1 + $0x3ec] ss:$16 sps:$4 sm:$0xff]  }
  0x71   :  { %1805 = vmatprep.subr.bf16.mxu1 %v3106_v8  ;;  %v3188_v7 = vld [vmem:[%s4503_s1 + $0x1ac] ss:$16 sps:$4 sm:$0xff]   ;;  %v3183_v8 = vld [vmem:[%s4503_s1 + $0x3e8] ss:$16 sps:$4 sm:$0xff]  }
  0x73   :  { %1765 = vmatpush2.bf16.msra.mxu0 %v3101_v9  ;;  %v3186_v9 = vld [vmem:[%s4503_s1 + $0x1a8] ss:$16 sps:$4 sm:$0xff]  }
  0x74   :  { %1806 = vmatpush2.bf16.msra.mxu1 %v3104_v10  ;;  %1766 = vmatprep.subr.bf16.mxu0 %v3109_v11  ;;  %v3191_v10 = vld [vmem:[%s4503_s1 + $0x3cc] ss:$16 sps:$4 sm:$0xff]  }
  0x75   :  { %1807 = vmatprep.subr.bf16.mxu1 %v3112_v12  ;;  %v3194_v11 = vld [vmem:[%s4503_s1 + $0x18c] ss:$16 sps:$4 sm:$0xff]   ;;  %v3189_v12 = vld [vmem:[%s4503_s1 + $0x3c8] ss:$16 sps:$4 sm:$0xff]  }
  0x77   :  { %1767 = vmatpush2.bf16.msra.mxu0 %v3107_v13  ;;  %v3192_v13 = vld [vmem:[%s4503_s1 + $0x188] ss:$16 sps:$4 sm:$0xff]  }
  0x78   :  { %1808 = vmatpush2.bf16.msra.mxu1 %v3110_v15  ;;  %1768 = vmatprep.subr.bf16.mxu0 %v3115_v16  ;;  %v3197_v15 = vld [vmem:[%s4503_s1 + $0x3ac] ss:$16 sps:$4 sm:$0xff]  }
  0x79   :  { %1809 = vmatprep.subr.bf16.mxu1 %v3118_v17  ;;  %v3200_v16 = vld [vmem:[%s4503_s1 + $0x16c] ss:$16 sps:$4 sm:$0xff]   ;;  %v3195_v17 = vld [vmem:[%s4503_s1 + $0x3a8] ss:$16 sps:$4 sm:$0xff]  }
  0x7b   :  { %1769 = vmatpush2.bf16.msra.mxu0 %v3113_v20  ;;  %v3198_v20 = vld [vmem:[%s4503_s1 + $0x168] ss:$16 sps:$4 sm:$0xff]  }
  0x7c   :  { %1810 = vmatpush2.bf16.msra.mxu1 %v3116_v21  ;;  %1770 = vmatprep.subr.bf16.mxu0 %v3121_v22  ;;  %v3203_v21 = vld [vmem:[%s4503_s1 + $0x38c] ss:$16 sps:$4 sm:$0xff]  }
  0x7d   :  { %1811 = vmatprep.subr.bf16.mxu1 %v3124_v23  ;;  %v3206_v22 = vld [vmem:[%s4503_s1 + $0x14c] ss:$16 sps:$4 sm:$0xff]   ;;  %v3201_v23 = vld [vmem:[%s4503_s1 + $0x388] ss:$16 sps:$4 sm:$0xff]  }
  0x7f   :  { %1771 = vmatpush2.bf16.msra.mxu0 %v3119_v25  ;;  %v3204_v25 = vld [vmem:[%s4503_s1 + $0x148] ss:$16 sps:$4 sm:$0xff]  }
  0x80   :  { %1812 = vmatpush2.bf16.msra.mxu1 %v3122_v26  ;;  %1836 = vmatprep.subr.bf16.mxu0 %v3128_v27  ;;  %v3209_v26 = vld [vmem:[%s4503_s1 + $0x36c] ss:$16 sps:$4 sm:$0xff]  }
  0x81   :  { %1863 = vmatprep.subr.bf16.mxu1 %v3131_v28  ;;  %v3212_v27 = vld [vmem:[%s4503_s1 + $0x12c] ss:$16 sps:$4 sm:$0xff]   ;;  %v3207_v28 = vld [vmem:[%s4503_s1 + $0x368] ss:$16 sps:$4 sm:$0xff]  }
  0x82   :  { %1773 = vmatmul.mubr.bf16.vlgmr.msra.gmra.mxu0 %v3623_v63 }
  0x83   :  { %1814 = vmatmul.mubr.bf16.vlgmr.msra.gmra.mxu1 %v3888_v29  ;;  %1837 = vmatpush1.bf16.msra.mxu0 %v3126_v30  ;;  %v3210_v30 = vld [vmem:[%s4503_s1 + $0x128] ss:$16 sps:$4 sm:$0xff]  }
  0x84   :  { %1864 = vmatpush1.bf16.msra.mxu1 %v3129_v31  ;;  %1854 = vmatprep.mubr.bf16.mxu0 %v3432_v36  ;;  %v3215_v31 = vld [vmem:[%s4503_s1 + $0x34c] ss:$16 sps:$4 sm:$0xff]  }
  0x85   :  { %1865 = vmatprep.subr.bf16.mxu1 %v3134_v32  ;;  %1904 = vmatprep.subr.bf16.mxu0 %v3137_v33  ;;  %v3218_v32 = vld [vmem:[%s4503_s1 + $0x10c] ss:$16 sps:$4 sm:$0xff]   ;;  %v3213_v33 = vld [vmem:[%s4503_s1 + $0x348] ss:$16 sps:$4 sm:$0xff]  }
  0x86   :  { %1895 = vmatprep.mubr.bf16.mxu1 %v3620_v62  ;;  %v3141_v62 = vld [vmem:[%s4503_s1 + $0x2c8] ss:$16 sps:$4 sm:$0xff]  }
  0x88   :  { %1866 = vmatpush1.bf16.msra.mxu1 %v3132_v34  ;;  %v3216_v34 = vld [vmem:[%s4503_s1 + $0x108] ss:$16 sps:$4 sm:$0xff]  }
  0x89   :  { %1867 = vmatprep.subr.bf16.mxu1 %v3140_v37  ;;  %v3224_v37 = vld [vmem:[%s4503_s1 + $0x4ec] ss:$16 sps:$4 sm:$0xff]  }
  0x8a   :  { %2866 = vmatmul.mubr.msk.bf16.vlgmr.msra.gmra.mxu0 %vm1654_vm0, %v3916_v38 }
  0x8b   :  { %1905 = vmatpush1.bf16.msra.mxu0 %v3135_v39  ;;  %1936 = vmatprep.mubr.bf16.mxu0 %v3636_v3  ;;  %v3158_v3 = vld [vmem:[%s4503_s1 + $0x4c] ss:$16 sps:$4 sm:$0xff]   ;;  %v3219_v39 = vld [vmem:[%s4503_s1 + $0x328] ss:$16 sps:$4 sm:$0xff]  }
  0x8c   :  { %1868 = vmatpush1.bf16.msra.mxu1 %v3138_v40  ;;  %1906 = vmatprep.subr.bf16.mxu0 %v3143_v41  ;;  %v3222_v40 = vld [vmem:[%s4503_s1 + $0x4e8] ss:$16 sps:$4 sm:$0xff]   ;;  %v3227_v41 = vld [vmem:[%s4503_s1 + $0x30c] ss:$16 sps:$4 sm:$0xff]  }
  0x8d   :  { %1869 = vmatprep.subr.bf16.mxu1 %v3146_v49  ;;  %v3230_v49 = vld [vmem:[%s4503_s1 + $0x4cc] ss:$16 sps:$4 sm:$0xff]  }
  0x8f   :  { %1907 = vmatpush1.bf16.msra.mxu0 %v3141_v62  ;;  %v3225_v62 = vld [vmem:[%s4503_s1 + $0x308] ss:$16 sps:$4 sm:$0xff]  }
  0x90   :  { %1870 = vmatpush1.bf16.msra.mxu1 %v3144_v42  ;;  %1908 = vmatprep.subr.bf16.mxu0 %v3149_v43  ;;  %v3228_v42 = vld [vmem:[%s4503_s1 + $0x4c8] ss:$16 sps:$4 sm:$0xff]   ;;  %v3233_v43 = vld [vmem:[%s4503_s1 + $0x6ec] ss:$16 sps:$4 sm:$0xff]  }
  0x91   :  { %1871 = vmatprep.subr.bf16.mxu1 %v3152_v44  ;;  %v3236_v44 = vld [vmem:[%s4503_s1 + $0x4ac] ss:$16 sps:$4 sm:$0xff]  }
  0x93   :  { %1909 = vmatpush1.bf16.msra.mxu0 %v3147_v45  ;;  %v3231_v45 = vld [vmem:[%s4503_s1 + $0x6e8] ss:$16 sps:$4 sm:$0xff]  }
  0x94   :  { %1872 = vmatpush1.bf16.msra.mxu1 %v3150_v46  ;;  %1910 = vmatprep.subr.bf16.mxu0 %v3155_v47  ;;  %v3239_v46 = vld [vmem:[%s4503_s1 + $0x6cc] ss:$16 sps:$4 sm:$0xff]  }
  0x95   :  { %1873 = vmatprep.subr.bf16.mxu1 %v3158_v3  ;;  %v3242_v47 = vld [vmem:[%s4503_s1 + $0x48c] ss:$16 sps:$4 sm:$0xff]   ;;  %v3237_v3 = vld [vmem:[%s4503_s1 + $0x6c8] ss:$16 sps:$4 sm:$0xff]  }
  0x97   :  { %1911 = vmatpush1.bf16.msra.mxu0 %v3153_v48  ;;  %v3245_v48 = vld [vmem:[%s4503_s1 + $0x6ac] ss:$16 sps:$4 sm:$0xff]  }
  0x98   :  { %1874 = vmatpush1.bf16.msra.mxu1 %v3156_v50  ;;  %1912 = vmatprep.subr.bf16.mxu0 %v3161_v51  ;;  %v3248_v50 = vld [vmem:[%s4503_s1 + $0x46c] ss:$16 sps:$4 sm:$0xff]  }
  0x99   :  { %1875 = vmatprep.subr.bf16.mxu1 %v3164_v52 }
  0x9b   :  { %1913 = vmatpush1.bf16.msra.mxu0 %v3159_v53 }
  0x9c   :  { %1876 = vmatpush1.bf16.msra.mxu1 %v3162_v54  ;;  %1914 = vmatprep.subr.bf16.mxu0 %v3167_v55 }
  0x9d   :  { %1877 = vmatprep.subr.bf16.mxu1 %v3170_v56 }
  0x9f   :  { %1915 = vmatpush1.bf16.msra.mxu0 %v3165_v57 }
  0xa0   :  { %1878 = vmatpush1.bf16.msra.mxu1 %v3168_v58  ;;  %1916 = vmatprep.subr.bf16.mxu0 %v3173_v59 }
  0xa1   :  { %1879 = vmatprep.subr.bf16.mxu1 %v3176_v60 }
  0xa3   :  { %1917 = vmatpush1.bf16.msra.mxu0 %v3171_v61 }
  0xa4   :  { %1880 = vmatpush2.bf16.msra.mxu1 %v3174_v0  ;;  %1918 = vmatprep.subr.bf16.mxu0 %v3179_v1 }
  0xa5   :  { %1881 = vmatprep.subr.bf16.mxu1 %v3182_v2 }
  0xa7   :  { %1919 = vmatpush1.bf16.msra.mxu0 %v3177_v4 }
  0xa8   :  { %1882 = vmatpush2.bf16.msra.mxu1 %v3180_v5  ;;  %1920 = vmatprep.subr.bf16.mxu0 %v3185_v6 }
  0xa9   :  { %1883 = vmatprep.subr.bf16.mxu1 %v3188_v7 }
  0xab   :  { %1921 = vmatpush2.bf16.msra.mxu0 %v3183_v8 }
  0xac   :  { %1884 = vmatpush2.bf16.msra.mxu1 %v3186_v9  ;;  %1922 = vmatprep.subr.bf16.mxu0 %v3191_v10 }
  0xad   :  { %1885 = vmatprep.subr.bf16.mxu1 %v3194_v11 }
  0xaf   :  { %1923 = vmatpush2.bf16.msra.mxu0 %v3189_v12 }
  0xb0   :  { %1886 = vmatpush2.bf16.msra.mxu1 %v3192_v13  ;;  %1924 = vmatprep.subr.bf16.mxu0 %v3197_v15 }
  0xb1   :  { %1887 = vmatprep.subr.bf16.mxu1 %v3200_v16 }
  0xb3   :  { %1925 = vmatpush2.bf16.msra.mxu0 %v3195_v17 }
  0xb4   :  { %1888 = vmatpush2.bf16.msra.mxu1 %v3198_v20  ;;  %1926 = vmatprep.subr.bf16.mxu0 %v3203_v21 }
  0xb5   :  { %1889 = vmatprep.subr.bf16.mxu1 %v3206_v22 }
  0xb7   :  { %1927 = vmatpush2.bf16.msra.mxu0 %v3201_v23 }
  0xb8   :  { %1890 = vmatpush2.bf16.msra.mxu1 %v3204_v25  ;;  %1928 = vmatprep.subr.bf16.mxu0 %v3209_v26 }
  0xb9   :  { %1891 = vmatprep.subr.bf16.mxu1 %v3212_v27 }
  0xbb   :  { %1929 = vmatpush2.bf16.msra.mxu0 %v3207_v28 }
  0xbc   :  { %1892 = vmatpush2.bf16.msra.mxu1 %v3210_v30  ;;  %1930 = vmatprep.subr.bf16.mxu0 %v3215_v31 }
  0xbd   :  { %1893 = vmatprep.subr.bf16.mxu1 %v3218_v32 }
  0xbf   :  { %1931 = vmatpush2.bf16.msra.mxu0 %v3213_v33 }
  0xc0   :  { %1894 = vmatpush2.bf16.msra.mxu1 %v3216_v34  ;;  %1932 = vmatprep.subr.bf16.mxu0 %v3221_v35 }
  0xc1   :  { %1945 = vmatprep.subr.bf16.mxu1 %v3224_v37 }
  0xc3   :  { %1896 = vmatmul.mubr.bf16.vlgmr.msra.gmra.mxu1 %v3668_v14  ;;  %1933 = vmatpush2.bf16.msra.mxu0 %v3219_v39  ;;  %v3234_v14 = vld [vmem:[%s4503_s1 + $0x4a8] ss:$16 sps:$4 sm:$0xff]  }
  0xc4   :  { %1946 = vmatpush1.bf16.msra.mxu1 %v3222_v40  ;;  %1934 = vmatprep.subr.bf16.mxu0 %v3227_v41 }
  0xc5   :  { %1947 = vmatprep.subr.bf16.mxu1 %v3230_v49  ;;  %1977 = vmatprep.mubr.bf16.mxu1 %v3680_v18  ;;  %v3240_v18 = vld [vmem:[%s4503_s1 + $0x488] ss:$16 sps:$4 sm:$0xff]  }
  0xc7   :  { %1935 = vmatpush2.bf16.msra.mxu0 %v3225_v62 }
  0xc8   :  { %1948 = vmatpush1.bf16.msra.mxu1 %v3228_v42  ;;  %1986 = vmatprep.subr.bf16.mxu0 %v3233_v43 }
  0xc9   :  { %1949 = vmatprep.subr.bf16.mxu1 %v3236_v44 }
  0xca   :  { %1937 = vmatmul.mubr.bf16.vlgmr.msra.gmra.mxu0 %v3684_v19 }
  0xcb   :  { %1987 = vmatpush1.bf16.msra.mxu0 %v3231_v45  ;;  %2018 = vmatprep.mubr.bf16.mxu0 %v3700_v24 }
  0xcc   :  { %1950 = vmatpush1.bf16.msra.mxu1 %v3234_v14  ;;  %1988 = vmatprep.subr.bf16.mxu0 %v3239_v46 }
  0xcd   :  { %1951 = vmatprep.subr.bf16.mxu1 %v3242_v47 }
  0xce   :  { %9 = vsyncpa [#allocation3], 0  ;;  %v3243_v19 = vld [vmem:[%s4503_s1 + $0x6a8] ss:$16 sps:$4 sm:$0xff]   ;;  %v3251_v52 = vld [vmem:[%s4503_s1 + $0x68c] ss:$16 sps:$4 sm:$0xff]  }
  0xcf   :  { %1989 = vmatpush1.bf16.msra.mxu0 %v3237_v3  ;;  %v3246_v51 = vld [vmem:[%s4503_s1 + $0x468] ss:$16 sps:$4 sm:$0xff]   ;;  %v3254_v24 = vld [vmem:[%s4503_s1 + $0x44c] ss:$16 sps:$4 sm:$0xff]   ;;  %vm2545_vm1 = vcmask 261120   ;;  %s3433_s15 = smov [#allocation2]  }
  0xd0   :  { %1952 = vmatpush1.bf16.msra.mxu1 %v3240_v18  ;;  %1990 = vmatprep.subr.bf16.mxu0 %v3245_v48  ;;  %v3249_v53 = vld [vmem:[%s4503_s1 + $0x688] ss:$16 sps:$4 sm:$0xff]   ;;  %v3257_v55 = vld [vmem:[%s4503_s1 + $0x66c] ss:$16 sps:$4 sm:$0xff]   ;;  %s2597_s16 = sshll.u32 %s3433_s15, 4  ;;  %s2598_s16 = int_to_ptr.vmem [resolvable:$true] %s2597_s16 }
  0xd1   :  { %1953 = vmatprep.subr.bf16.mxu1 %v3248_v50  ;;  %v3252_v54 = vld [vmem:[%s4503_s1 + $0x448] ss:$16 sps:$4 sm:$0xff]   ;;  %v3260_v56 = vld [vmem:[%s4503_s1 + $0x42c] ss:$16 sps:$4 sm:$0xff]   ;;  %p3414_p1 = scmp.lt.s32.totalorder %s2598_s16, %s2598_s16 }
  0xd2   :  { %v3255_v57 = vld [vmem:[%s4503_s1 + $0x668] ss:$16 sps:$4 sm:$0xff]   ;;  %v3263_v59 = vld [vmem:[%s4503_s1 + $0x64c] ss:$16 sps:$4 sm:$0xff]  }
  0xd3   :  { %1991 = vmatpush1.bf16.msra.mxu0 %v3243_v19  ;;  %v3258_v58 = vld [vmem:[%s4503_s1 + $0x428] ss:$16 sps:$4 sm:$0xff]   ;;  %v3266_v60 = vld [vmem:[%s4503_s1 + $0x40c] ss:$16 sps:$4 sm:$0xff]  }
  0xd4   :  { %1954 = vmatpush1.bf16.msra.mxu1 %v3246_v51  ;;  %1992 = vmatprep.subr.bf16.mxu0 %v3251_v52  ;;  %v3261_v61 = vld [vmem:[%s4503_s1 + $0x648] ss:$16 sps:$4 sm:$0xff]   ;;  %v3269_v1 = vld [vmem:[%s4503_s1 + $0x62c] ss:$16 sps:$4 sm:$0xff]  }
  0xd5   :  { %1955 = vmatprep.subr.bf16.mxu1 %v3254_v24  ;;  %v3264_v0 = vld [vmem:[%s4503_s1 + $0x408] ss:$16 sps:$4 sm:$0xff]   ;;  %v3272_v2 = vld [vmem:[%s4503_s1 + $0x5ec] ss:$16 sps:$4 sm:$0xff]  }
  0xd6   :  { %v3267_v4 = vld [vmem:[%s4503_s1 + $0x628] ss:$16 sps:$4 sm:$0xff]   ;;  %v3275_v6 = vld [vmem:[%s4503_s1 + $0x60c] ss:$16 sps:$4 sm:$0xff]  }
  0xd7   :  { %1993 = vmatpush1.bf16.msra.mxu0 %v3249_v53  ;;  %v3270_v5 = vld [vmem:[%s4503_s1 + $0x5e8] ss:$16 sps:$4 sm:$0xff]   ;;  %v3278_v7 = vld [vmem:[%s4503_s1 + $0x5cc] ss:$16 sps:$4 sm:$0xff]  }
  0xd8   :  { %1956 = vmatpush1.bf16.msra.mxu1 %v3252_v54  ;;  %1994 = vmatprep.subr.bf16.mxu0 %v3257_v55  ;;  %v3273_v8 = vld [vmem:[%s4503_s1 + $0x608] ss:$16 sps:$4 sm:$0xff]   ;;  %v3281_v10 = vld [vmem:[%s4503_s1 + $0x7ec] ss:$16 sps:$4 sm:$0xff]  }
  0xd9   :  { %1957 = vmatprep.subr.bf16.mxu1 %v3260_v56  ;;  %v3276_v9 = vld [vmem:[%s4503_s1 + $0x5c8] ss:$16 sps:$4 sm:$0xff]   ;;  %v3284_v11 = vld [vmem:[%s4503_s1 + $0x5ac] ss:$16 sps:$4 sm:$0xff]  }
  0xda   :  { %v3279_v12 = vld [vmem:[%s4503_s1 + $0x7e8] ss:$16 sps:$4 sm:$0xff]   ;;  %v3287_v15 = vld [vmem:[%s4503_s1 + $0x7cc] ss:$16 sps:$4 sm:$0xff]  }
  0xdb   :  { %1995 = vmatpush1.bf16.msra.mxu0 %v3255_v57  ;;  %v3282_v13 = vld [vmem:[%s4503_s1 + $0x5a8] ss:$16 sps:$4 sm:$0xff]   ;;  %v3290_v16 = vld [vmem:[%s4503_s1 + $0x58c] ss:$16 sps:$4 sm:$0xff]  }
  0xdc   :  { %1958 = vmatpush1.bf16.msra.mxu1 %v3258_v58  ;;  %1996 = vmatprep.subr.bf16.mxu0 %v3263_v59  ;;  %v3285_v17 = vld [vmem:[%s4503_s1 + $0x7c8] ss:$16 sps:$4 sm:$0xff]   ;;  %v3293_v21 = vld [vmem:[%s4503_s1 + $0x7ac] ss:$16 sps:$4 sm:$0xff]  }
  0xdd   :  { %1959 = vmatprep.subr.bf16.mxu1 %v3266_v60  ;;  %v3288_v20 = vld [vmem:[%s4503_s1 + $0x588] ss:$16 sps:$4 sm:$0xff]   ;;  %v3296_v22 = vld [vmem:[%s4503_s1 + $0x56c] ss:$16 sps:$4 sm:$0xff]  }
  0xde   :  { %v3291_v23 = vld [vmem:[%s4503_s1 + $0x7a8] ss:$16 sps:$4 sm:$0xff]   ;;  %v3299_v26 = vld [vmem:[%s4503_s1 + $0x78c] ss:$16 sps:$4 sm:$0xff]  }
  0xdf   :  { %1997 = vmatpush1.bf16.msra.mxu0 %v3261_v61  ;;  %v3294_v25 = vld [vmem:[%s4503_s1 + $0x568] ss:$16 sps:$4 sm:$0xff]   ;;  %v3302_v27 = vld [vmem:[%s4503_s1 + $0x54c] ss:$16 sps:$4 sm:$0xff]  }
  0xe0   :  { %1960 = vmatpush1.bf16.msra.mxu1 %v3264_v0  ;;  %1998 = vmatprep.subr.bf16.mxu0 %v3269_v1  ;;  %v3297_v28 = vld [vmem:[%s4503_s1 + $0x788] ss:$16 sps:$4 sm:$0xff]   ;;  %v3305_v31 = vld [vmem:[%s4503_s1 + $0x76c] ss:$16 sps:$4 sm:$0xff]  }
  0xe1   :  { %1961 = vmatprep.subr.bf16.mxu1 %v3272_v2  ;;  %v3300_v30 = vld [vmem:[%s4503_s1 + $0x548] ss:$16 sps:$4 sm:$0xff]   ;;  %v3308_v32 = vld [vmem:[%s4503_s1 + $0x52c] ss:$16 sps:$4 sm:$0xff]  }
  0xe2   :  { %v3303_v33 = vld [vmem:[%s4503_s1 + $0x768] ss:$16 sps:$4 sm:$0xff]   ;;  %v3311_v35 = vld [vmem:[%s4503_s1 + $0x74c] ss:$16 sps:$4 sm:$0xff]  }
  0xe3   :  { %1999 = vmatpush1.bf16.msra.mxu0 %v3267_v4  ;;  %v3306_v34 = vld [vmem:[%s4503_s1 + $0x528] ss:$16 sps:$4 sm:$0xff]   ;;  %v3314_v37 = vld [vmem:[%s4503_s1 + $0x50c] ss:$16 sps:$4 sm:$0xff]  }
  0xe4   :  { %1962 = vmatpush2.bf16.msra.mxu1 %v3270_v5  ;;  %2000 = vmatprep.subr.bf16.mxu0 %v3275_v6  ;;  %v3309_v39 = vld [vmem:[%s4503_s1 + $0x748] ss:$16 sps:$4 sm:$0xff]   ;;  %v3317_v41 = vld [vmem:[%s4503_s1 + $0x72c] ss:$16 sps:$4 sm:$0xff]  }
  0xe5   :  { %1963 = vmatprep.subr.bf16.mxu1 %v3278_v7  ;;  %v3312_v40 = vld [vmem:[%s4503_s1 + $0x508] ss:$16 sps:$4 sm:$0xff]   ;;  %v3320_v62 = vld [vmem:[%s4503_s1 + $0x70c] ss:$16 sps:$4 sm:$0xff]  }
  0xe6   :  { %v3315_v49 = vld [vmem:[%s4503_s1 + $0x728] ss:$16 sps:$4 sm:$0xff]   ;;  %v3323_v47 = vld [vmem:[%s4503_s1 + $0x80c] ss:$16 sps:$4 sm:$0xff]  }
  0xe7   :  { %2001 = vmatpush1.bf16.msra.mxu0 %v3273_v8  ;;  %v3318_v45 = vld [vmem:[%s4503_s1 + $0x708] ss:$16 sps:$4 sm:$0xff]   ;;  %v3326_v51 = vld [vmem:[%s4504_s2 + $0x74] ss:$8 sps:$4 sm:$0xff]   ;;  %v3329_v24 = vld [vmem:[%s4504_s2 + $0x64] ss:$8 sps:$4 sm:$0xff]  }
  0xe8   :  { %1964 = vmatpush2.bf16.msra.mxu1 %v3276_v9  ;;  %2002 = vmatprep.subr.bf16.mxu0 %v3281_v10  ;;  %v3324_v52 = vld [vmem:[%s4504_s2 + $0x70] ss:$8 sps:$4 sm:$0xff]   ;;  %v3377_v54 = vld [vmem:[%s4504_s2 + $0x164] ss:$8 sps:$4 sm:$0xff]   ;;  %v3327_v55 = vld [vmem:[%s4504_s2 + $0x60] ss:$8 sps:$4 sm:$0xff]  }
  0xe9   :  { %1965 = vmatprep.subr.bf16.mxu1 %v3284_v11  ;;  %v3372_v53 = vld [vmem:[%s4504_s2 + $0x170] ss:$8 sps:$4 sm:$0xff]   ;;  %v3375_v56 = vld [vmem:[%s4504_s2 + $0x160] ss:$8 sps:$4 sm:$0xff]   ;;  %v3332_v57 = vld [vmem:[%s4504_s2 + $0x54] ss:$8 sps:$4 sm:$0xff]  }
  0xea   :  { %v3330_v58 = vld [vmem:[%s4504_s2 + $0x50] ss:$8 sps:$4 sm:$0xff]   ;;  %v3335_v60 = vld [vmem:[%s4504_s2 + $0x44] ss:$8 sps:$4 sm:$0xff]   ;;  %v3333_v61 = vld [vmem:[%s4504_s2 + $0x40] ss:$8 sps:$4 sm:$0xff]  }
  0xeb   :  { %2003 = vmatpush2.bf16.msra.mxu0 %v3279_v12  ;;  %v3378_v59 = vld [vmem:[%s4504_s2 + $0x150] ss:$8 sps:$4 sm:$0xff]   ;;  %v3338_v0 = vld [vmem:[%s4504_s2 + $0x34] ss:$8 sps:$4 sm:$0xff]   ;;  %v3341_v2 = vld [vmem:[%s4504_s2 + $0x24] ss:$8 sps:$4 sm:$0xff]  }
  0xec   :  { %1966 = vmatpush2.bf16.msra.mxu1 %v3282_v13  ;;  %2004 = vmatprep.subr.bf16.mxu0 %v3287_v15  ;;  %v3336_v1 = vld [vmem:[%s4504_s2 + $0x30] ss:$8 sps:$4 sm:$0xff]   ;;  %v3339_v4 = vld [vmem:[%s4504_s2 + $0x20] ss:$8 sps:$4 sm:$0xff]   ;;  %v3344_v5 = vld [vmem:[%s4504_s2 + $0x14] ss:$8 sps:$4 sm:$0xff]  }
  0xed   :  { %1967 = vmatprep.subr.bf16.mxu1 %v3290_v16  ;;  %v3342_v6 = vld [vmem:[%s4504_s2 + $0x10] ss:$8 sps:$4 sm:$0xff]   ;;  %v3347_v7 = vld [vmem:[%s4504_s2 + $0x4] ss:$8 sps:$4 sm:$0xff]   ;;  %v3345_v8 = vld [vmem:[%s4504_s2] ss:$8 sps:$4 sm:$0xff]  }
  0xee   :  { %v3350_v9 = vld [vmem:[%s4504_s2 + $0xf4] ss:$8 sps:$4 sm:$0xff]   ;;  %v3348_v10 = vld [vmem:[%s4504_s2 + $0xf0] ss:$8 sps:$4 sm:$0xff]   ;;  %v3353_v11 = vld [vmem:[%s4504_s2 + $0xe4] ss:$8 sps:$4 sm:$0xff]  }
  0xef   :  { %2005 = vmatpush2.bf16.msra.mxu0 %v3285_v17  ;;  %v3351_v12 = vld [vmem:[%s4504_s2 + $0xe0] ss:$8 sps:$4 sm:$0xff]   ;;  %v3356_v13 = vld [vmem:[%s4504_s2 + $0xd4] ss:$8 sps:$4 sm:$0xff]   ;;  %v3354_v15 = vld [vmem:[%s4504_s2 + $0xd0] ss:$8 sps:$4 sm:$0xff]  }
  0xf0   :  { %1968 = vmatpush2.bf16.msra.mxu1 %v3288_v20  ;;  %2006 = vmatprep.subr.bf16.mxu0 %v3293_v21  ;;  %v3359_v16 = vld [vmem:[%s4504_s2 + $0xc4] ss:$8 sps:$4 sm:$0xff]   ;;  %v3357_v17 = vld [vmem:[%s4504_s2 + $0xc0] ss:$8 sps:$4 sm:$0xff]   ;;  %v3362_v20 = vld [vmem:[%s4504_s2 + $0xb4] ss:$8 sps:$4 sm:$0xff]  }
  0xf1   :  { %1969 = vmatprep.subr.bf16.mxu1 %v3296_v22  ;;  %v3360_v21 = vld [vmem:[%s4504_s2 + $0xb0] ss:$8 sps:$4 sm:$0xff]   ;;  %v3365_v22 = vld [vmem:[%s4504_s2 + $0xa4] ss:$8 sps:$4 sm:$0xff]  }
  0xf3   :  { %2007 = vmatpush2.bf16.msra.mxu0 %v3291_v23 }
  0xf4   :  { %1970 = vmatpush2.bf16.msra.mxu1 %v3294_v25  ;;  %2008 = vmatprep.subr.bf16.mxu0 %v3299_v26  ;;  %v3383_v26 = vld [vmem:[%s4504_s2 + $0x144] ss:$8 sps:$4 sm:$0xff]  }
  0xf5   :  { %1971 = vmatprep.subr.bf16.mxu1 %v3302_v27  ;;  %v3363_v27 = vld [vmem:[%s4504_s2 + $0xa0] ss:$8 sps:$4 sm:$0xff]  }
  0xf7   :  { %2009 = vmatpush2.bf16.msra.mxu0 %v3297_v28  ;;  %v3381_v28 = vld [vmem:[%s4504_s2 + $0x140] ss:$8 sps:$4 sm:$0xff]  }
  0xf8   :  { %1972 = vmatpush2.bf16.msra.mxu1 %v3300_v30  ;;  %2010 = vmatprep.subr.bf16.mxu0 %v3305_v31 }
  0xf9   :  { %1973 = vmatprep.subr.bf16.mxu1 %v3308_v32  ;;  %v3368_v32 = vld [vmem:[%s4504_s2 + $0x94] ss:$8 sps:$4 sm:$0xff]  }
  0xfb   :  { %2011 = vmatpush2.bf16.msra.mxu0 %v3303_v33 }
  0xfc   :  { %1974 = vmatpush2.bf16.msra.mxu1 %v3306_v34  ;;  %2012 = vmatprep.subr.bf16.mxu0 %v3311_v35  ;;  %v3384_v34 = vld [vmem:[%s4504_s2 + $0x130] ss:$8 sps:$4 sm:$0xff]   ;;  %v3386_v35 = vld [vmem:[%s4504_s2 + $0x134] ss:$8 sps:$4 sm:$0xff]  }
  0xfd   :  { %1975 = vmatprep.subr.bf16.mxu1 %v3314_v37 }
  0xff   :  { %2013 = vmatpush2.bf16.msra.mxu0 %v3309_v39 }
 0x100   :  { %1976 = vmatpush2.bf16.msra.mxu1 %v3312_v40  ;;  %2014 = vmatprep.subr.bf16.mxu0 %v3317_v41  ;;  %v3366_v41 = vld [vmem:[%s4504_s2 + $0x90] ss:$8 sps:$4 sm:$0xff]  }
 0x102   :  { %v1692_v42 = vpop.f32.mrf.mxu0 }
 0x103   :  { %v1733_v43 = vpop.f32.mrf.mxu1  ;;  %1978 = vmatmul.mubr.bf16.vlgmr.msra.gmra.mxu1 %v3623_v63  ;;  %2015 = vmatpush2.bf16.msra.mxu0 %v3315_v49  ;;  %v3321_v63 = vld [vmem:[%s4503_s1 + $0x808] ss:$16 sps:$4 sm:$0xff]  }
 0x104   :  { %v4289_v44 = vadd.f32 %v1733_v43, %v1692_v42  ;;  %v1694_v14 = vpop.f32.mrf.mxu0  ;;  %2016 = vmatprep.subr.bf16.mxu0 %v3320_v62  ;;  %v3371_v42 = vld [vmem:[%s4504_s2 + $0x84] ss:$8 sps:$4 sm:$0xff]  }
 0x105   :  { %v1735_v46 = vpop.f32.mrf.mxu1 }
 0x106   :  { %v4297_v3 = vadd.f32 %v1735_v46, %v1694_v14  ;;  %v1696_v18 = vpop.f32.mrf.mxu0 }
 0x107   :  { %v1737_v48 = vpop.f32.mrf.mxu1  ;;  %2017 = vmatpush2.bf16.msra.mxu0 %v3318_v45  ;;  %v3389_v45 = vld [vmem:[%s4504_s2 + $0x124] ss:$8 sps:$4 sm:$0xff]  }
 0x108   :  { %v1697_v50 = vpop.f32.mrf.mxu0  ;;  %2041 = vmatprep.subr.bf16.mxu0 %v3323_v47  ;;  %v3369_v47 = vld [vmem:[%s4504_s2 + $0x80] ss:$8 sps:$4 sm:$0xff]  }
 0x109   :  { %v1738_v19 = vpop.f32.mrf.mxu1 }
 0x10a   :  { %2019 = vmatmul.mubr.bf16.vlgmr.msra.gmra.mxu0 %v3888_v29  ;;  %v3374_v29 = vld [vmem:[%s4504_s2 + $0x174] ss:$8 sps:$4 sm:$0xff]  }
 0x10b   :  { %2042 = vmatpush1.bf16.msra.mxu0 %v3321_v63  ;;  %2059 = vmatprep.mubr.bf16.mxu0 %v3432_v36  ;;  %v3392_v19 = vld [vmem:[%s4504_s2 + $0x114] ss:$8 sps:$4 sm:$0xff]  }
 0x10c   :  { %2379 = vmatprep.subr.bf16.mxu0 %v3326_v51  ;;  %2420 = vmatprep.subr.bf16.mxu1 %v3374_v29 }
 0x10d   :  { %2421 = vmatpush1.bf16.msra.mxu1 %v3372_v53 }
 0x10e   :  { %2422 = vmatprep.subr.bf16.mxu1 %v3377_v54  ;;  %v3395_v54 = vld [vmem:[%s4504_s2 + $0x104] ss:$8 sps:$4 sm:$0xff]  }
 0x111   :  { %2423 = vmatpush1.bf16.msra.mxu1 %v3375_v56  ;;  %v3398_v56 = vld [vmem:[%s4504_s2 + $0x184] ss:$8 sps:$4 sm:$0xff]  }
 0x112   :  { %2867 = vmatmul.mubr.msk.bf16.vlgmr.msra.gmra.mxu0 %vm1654_vm0, %v3916_v38  ;;  %v3380_v38 = vld [vmem:[%s4504_s2 + $0x154] ss:$8 sps:$4 sm:$0xff]  }
 0x113   :  { %2380 = vmatpush1.bf16.msra.mxu0 %v3324_v52  ;;  %2424 = vmatprep.subr.bf16.mxu1 %v3380_v38  ;;  %v3390_v52 = vld [vmem:[%s4504_s2 + $0x110] ss:$8 sps:$4 sm:$0xff]  }
 0x114   :  { %2381 = vmatprep.subr.bf16.mxu0 %v3329_v24 }
 0x115   :  { %2425 = vmatpush1.bf16.msra.mxu1 %v3378_v59 }
 0x116   :  { %2426 = vmatprep.subr.bf16.mxu1 %v3383_v26 }
 0x117   :  { %2382 = vmatpush1.bf16.msra.mxu0 %v3327_v55  ;;  %v3393_v55 = vld [vmem:[%s4504_s2 + $0x100] ss:$8 sps:$4 sm:$0xff]  }
 0x118   :  { %2383 = vmatprep.subr.bf16.mxu0 %v3332_v57  ;;  %v3396_v57 = vld [vmem:[%s4504_s2 + $0x180] ss:$8 sps:$4 sm:$0xff]  }
 0x119   :  { %2427 = vmatpush1.bf16.msra.mxu1 %v3381_v28 }
 0x11a   :  { %2428 = vmatprep.subr.bf16.mxu1 %v3386_v35  ;;  %v3401_v35 = vld [vmem:[%s4505_s3 + $0x28] sm:$0xff]  }
 0x11b   :  { %2384 = vmatpush1.bf16.msra.mxu0 %v3330_v58 }
 0x11c   :  { %2385 = vmatprep.subr.bf16.mxu0 %v3335_v60 }
 0x11d   :  { %2429 = vmatpush1.bf16.msra.mxu1 %v3384_v34  ;;  %v3400_v34 = vld [vmem:[%s4505_s3 + $0x30] sm:$0xff]  }
 0x11e   :  { %2430 = vmatprep.subr.bf16.mxu1 %v3389_v45  ;;  %v3407_v45 = vld [vmem:[%s4505_s3 + $0x48] sm:$0xff]  }
 0x11f   :  { %2386 = vmatpush1.bf16.msra.mxu0 %v3333_v61 }
 0x120   :  { %2387 = vmatprep.subr.bf16.mxu0 %v3338_v0 }
 0x123   :  { %2388 = vmatpush1.bf16.msra.mxu0 %v3336_v1 }
 0x124   :  { %2389 = vmatprep.subr.bf16.mxu0 %v3341_v2 }
 0x127   :  { %2390 = vmatpush1.bf16.msra.mxu0 %v3339_v4 }
 0x128   :  { %2391 = vmatprep.subr.bf16.mxu0 %v3344_v5 }
 0x12b   :  { %2392 = vmatpush1.bf16.msra.mxu0 %v3342_v6 }
 0x12c   :  { %2393 = vmatprep.subr.bf16.mxu0 %v3347_v7 }
 0x12f   :  { %2394 = vmatpush1.bf16.msra.mxu0 %v3345_v8 }
 0x130   :  { %2395 = vmatprep.subr.bf16.mxu0 %v3350_v9 }
 0x133   :  { %2396 = vmatpush2.bf16.msra.mxu0 %v3348_v10 }
 0x134   :  { %2397 = vmatprep.subr.bf16.mxu0 %v3353_v11 }
 0x137   :  { %2398 = vmatpush2.bf16.msra.mxu0 %v3351_v12 }
 0x138   :  { %2399 = vmatprep.subr.bf16.mxu0 %v3356_v13 }
 0x13b   :  { %2400 = vmatpush2.bf16.msra.mxu0 %v3354_v15 }
 0x13c   :  { %2401 = vmatprep.subr.bf16.mxu0 %v3359_v16 }
 0x13f   :  { %2402 = vmatpush2.bf16.msra.mxu0 %v3357_v17 }
 0x140   :  { %2403 = vmatprep.subr.bf16.mxu0 %v3362_v20 }
 0x142   :  { %v1774_v23 = vpop.f32.mrf.mxu0 }
 0x143   :  { %v1815_v25 = vpop.f32.mrf.mxu1  ;;  %2404 = vmatpush2.bf16.msra.mxu0 %v3360_v21  ;;  %v1775_v33 = vadd.f32 %v1774_v23, %v4289_v44 }
 0x144   :  { %v1776_v30 = vpop.f32.mrf.mxu0  ;;  %2405 = vmatprep.subr.bf16.mxu0 %v3365_v22 }
 0x145   :  { %v1817_v31 = vpop.f32.mrf.mxu1  ;;  %v1777_v40 = vadd.f32 %v1776_v30, %v4297_v3  ;;  %v1816_v43 = vadd.f32 %v1815_v25, %v1775_v33  ;;  %v3387_v3 = vld [vmem:[%s4504_s2 + $0x120] ss:$8 sps:$4 sm:$0xff]  }
 0x146   :  { %v1778_v37 = vpop.f32.mrf.mxu0  ;;  %2431 = vmatpush1.bf16.msra.mxu1 %v3387_v3 }
 0x147   :  { %v1819_v39 = vpop.f32.mrf.mxu1  ;;  %2406 = vmatpush2.bf16.msra.mxu0 %v3363_v27  ;;  %v1818_v14 = vadd.f32 %v1817_v31, %v1777_v40  ;;  %2432 = vmatprep.subr.bf16.mxu1 %v3392_v19  ;;  %v3402_v37 = vld [vmem:[%s4505_s3 + $0x20] sm:$0xff]   ;;  %v3404_v40 = vld [vmem:[%s4505_s3 + $0x10] sm:$0xff]  }
 0x148   :  { %v1779_v49 = vpop.f32.mrf.mxu0  ;;  %2407 = vmatprep.subr.bf16.mxu0 %v3368_v32  ;;  %v3399_v32 = vld [vmem:[%s4505_s3 + $0x38] sm:$0xff]  }
 0x149   :  { %v1820_v62 = vpop.f32.mrf.mxu1  ;;  %v3403_v39 = vld [vmem:[%s4505_s3 + $0x18] sm:$0xff]   ;;  %v3406_v49 = vld [vmem:[%s4505_s3] sm:$0xff]  }
 0x14a   :  { %v1856_v44 = vpop.f32.mrf.mxu0  ;;  %2433 = vmatpush1.bf16.msra.mxu1 %v3390_v52 }
 0x14b   :  { %v1857_v46 = vadd.f32 %v1856_v44, %v1816_v43  ;;  %2408 = vmatpush2.bf16.msra.mxu0 %v3366_v41  ;;  %2434 = vmatprep.subr.bf16.mxu1 %v3395_v54  ;;  %v3405_v41 = vld [vmem:[%s4505_s3 + $0x8] sm:$0xff]  }
 0x14c   :  { %v1858_v18 = vpop.f32.mrf.mxu0  ;;  %2409 = vmatprep.subr.bf16.mxu0 %v3371_v42 }
 0x14d   :  { %v1859_v48 = vadd.f32 %v1858_v18, %v1818_v14  ;;  %v2068_v63 = vmax.f32 %v1857_v46, 0.0  ;;  %v3408_v14 = vld [vmem:[%s4505_s3 + $0x40] sm:$0xff]   ;;  %s3409_s3 = scalar_lea.vmem %s2598_s16, 32 }
 0x14e   :  { %v1860_v50 = vpop.f32.mrf.mxu0  ;;  %2435 = vmatpush1.bf16.msra.mxu1 %v3393_v55  ;;  %p3410_p0 = scmp.ne.s32.totalorder %s2598_s16, %s3409_s3  ;;  %p3415_p2 = scmp.lt.s32.totalorder %s3409_s3, %s3409_s3 }
 0x14f   :  { %v2069_v51 = vmax.f32 %v1859_v48, 0.0  ;;  %2410 = vmatpush2.bf16.msra.mxu0 %v3369_v47  ;;  %v2072_v29 = vpack.c.bf16 %v2068_v63, %v2068_v63  ;;  %2450 = vmatprep.subr.bf16.mxu1 %v3398_v56 }
 0x150   :  { %v1861_v24 = vpop.f32.mrf.mxu0  ;;  %p3416_p3 = por %p3415_p2, %p3414_p1 }
 0x151   :  { %v2073_v53 = vpack.c.bf16 %v2069_v51, %v2069_v51 }
 0x152   :  { %2451 = vmatpush2.bf16.msra.mxu1 %v3396_v57  ;;  %p3417_p4 = pnand %p3416_p3, %p3410_p0 }
 0x153   :  { %2411 = vmatprep.mubr.bf16.mxu0 %v2073_v53  ;;  %2549 = vmatprep.subr.bf16.mxu1 %v3432_v36 }
 0x154   :  { %2412 = vmatmul.mubr.bf16.vlgmr.msra.gmra.mxu0 %v2072_v29 }
 0x183   :  { %v1897_v38 = vpop.f32.mrf.mxu1 }
 0x185   :  { %v1899_v58 = vpop.f32.mrf.mxu1 }
 0x187   :  { %v1901_v59 = vpop.f32.mrf.mxu1 }
 0x189   :  { %v1902_v60 = vpop.f32.mrf.mxu1 }
 0x18a   :  { %v1938_v61 = vpop.f32.mrf.mxu0 }
 0x18b   :  { %v1939_v0 = vadd.f32 %v1938_v61, %v1897_v38 }
 0x18c   :  { %v1940_v1 = vpop.f32.mrf.mxu0 }
 0x18d   :  { %v1941_v2 = vadd.f32 %v1940_v1, %v1899_v58 }
 0x18e   :  { %v1942_v4 = vpop.f32.mrf.mxu0 }
 0x190   :  { %v1943_v5 = vpop.f32.mrf.mxu0 }
 0x1c3   :  { %v1979_v6 = vpop.f32.mrf.mxu1 }
 0x1c4   :  { %v1980_v13 = vadd.f32 %v1979_v6, %v1939_v0 }
 0x1c5   :  { %v1981_v7 = vpop.f32.mrf.mxu1 }
 0x1c6   :  { %v1982_v16 = vadd.f32 %v1981_v7, %v1941_v2 }
 0x1c7   :  { %v1983_v8 = vpop.f32.mrf.mxu1 }
 0x1c9   :  { %v1984_v9 = vpop.f32.mrf.mxu1 }
 0x1ca   :  { %v2020_v10 = vpop.f32.mrf.mxu0 }
 0x1cb   :  { %v2021_v17 = vadd.f32 %v2020_v10, %v1980_v13 }
 0x1cc   :  { %v2022_v11 = vpop.f32.mrf.mxu0 }
 0x1cd   :  { %v2023_v21 = vadd.f32 %v2022_v11, %v1982_v16 }
 0x1ce   :  { %v2024_v12 = vpop.f32.mrf.mxu0 }
 0x1d0   :  { %v2025_v15 = vpop.f32.mrf.mxu0 }
 0x1d2   :  { %v2061_v20 = vpop.f32.mrf.mxu0 }
 0x1d3   :  { %v2062_v22 = vadd.f32 %v2061_v20, %v2021_v17 }
 0x1d4   :  { %v2063_v23 = vpop.f32.mrf.mxu0 }
 0x1d5   :  { %v2064_v25 = vadd.f32 %v2063_v23, %v2023_v21  ;;  %v2070_v26 = vmax.f32 %v2062_v22, 0.0 }
 0x1d6   :  { %v2065_v27 = vpop.f32.mrf.mxu0 }
 0x1d7   :  { %v2071_v28 = vmax.f32 %v2064_v25, 0.0  ;;  %v2074_v33 = vpack.c.bf16 %v2070_v26, %v2070_v26 }
 0x1d8   :  { %v2066_v30 = vpop.f32.mrf.mxu0 }
 0x1d9   :  { %v2075_v31 = vpack.c.bf16 %v2071_v28, %v2071_v28 }
 0x1db   :  { %2918 = vmatprep.mubr.msk.bf16.mxu1 %vm1654_vm0, %v2075_v31 }
 0x1dc   :  { %2453 = vmatmul.mubr.bf16.vlgmr.msra.gmra.mxu1 %v2074_v33 }
 0x1dd   :  { %2550 = vmatpush1.bf16.msra.mxu1 %v3399_v32 }
 0x1de   :  { %2551 = vmatprep.subr.bf16.mxu1 %v3432_v36 }
 0x1e1   :  { %2552 = vmatpush1.bf16.msra.mxu1 %v3400_v34 }
 0x1e2   :  { %2553 = vmatprep.subr.bf16.mxu1 %v3432_v36 }
 0x1e5   :  { %2554 = vmatpush1.bf16.msra.mxu1 %v3401_v35 }
 0x1e6   :  { %2555 = vmatprep.subr.bf16.mxu1 %v3432_v36 }
 0x1e9   :  { %2556 = vmatpush1.bf16.msra.mxu1 %v3402_v37 }
 0x1ea   :  { %2557 = vmatprep.subr.bf16.mxu1 %v3432_v36 }
 0x1ed   :  { %2558 = vmatpush1.bf16.msra.mxu1 %v3403_v39 }
 0x1ee   :  { %2559 = vmatprep.subr.bf16.mxu1 %v3432_v36 }
 0x1f1   :  { %2560 = vmatpush1.bf16.msra.mxu1 %v3404_v40 }
 0x1f2   :  { %2561 = vmatprep.subr.bf16.mxu1 %v3432_v36 }
 0x1f5   :  { %2562 = vmatpush1.bf16.msra.mxu1 %v3405_v41 }
 0x1f6   :  { %2563 = vmatprep.subr.bf16.mxu1 %v3432_v36 }
 0x1f9   :  { %2564 = vmatpush1.bf16.msra.mxu1 %v3406_v49 }
 0x1fa   :  { %2577 = vmatprep.subr.bf16.mxu1 %v3432_v36 }
 0x1fd   :  { %2578 = vmatpush2.bf16.msra.mxu1 %v3407_v45 }
 0x1fe   :  { %2579 = vmatprep.subr.bf16.mxu1 %v3432_v36 }
 0x201   :  { %2580 = vmatpush2.bf16.msra.mxu1 %v3408_v14 }
 0x214   :  { %v2413_v62 = vpop.f32.mrf.mxu0 }
 0x216   :  { %v2415_v42 = vpop.f32.mrf.mxu0 }
 0x218   :  { %v2417_v43 = vpop.f32.mrf.mxu0 }
 0x21a   :  { %v2418_v44 = vpop.f32.mrf.mxu0 }
 0x29c   :  { %v2454_v46 = vpop.f32.mrf.mxu1 }
 0x29d   :  { %v2455_v47 = vadd.f32 %v2454_v46, %v2413_v62 }
 0x29e   :  { %v2456_v3 = vpop.f32.mrf.mxu1 }
 0x29f   :  { %v2457_v18 = vadd.f32 %v2456_v3, %v2415_v42  ;;  %v2461_v48 = vmax.f32 %v2455_v47, 0.0 }
 0x2a0   :  { %v2458_v63 = vpop.f32.mrf.mxu1 }
 0x2a1   :  { %v2462_v50 = vmax.f32 %v2457_v18, 0.0  ;;  %v2463_v52 = vpack.c.bf16 %v2461_v48, %v2461_v48 }
 0x2a2   :  { %v2459_v19 = vpop.f32.mrf.mxu1 }
 0x2a3   :  { %v2464_v51 = vpack.c.bf16 %v2462_v50, %v2462_v50 }
 0x2a5   :  { %2929 = vmatprep.mubr.msk.bf16.mxu1 %vm2545_vm1, %v2464_v51 }
 0x2a6   :  { %2582 = vmatmul.mubr.bf16.vlgmr.msra.gmra.mxu1 %v2463_v52 }
 0x366   :  { %v2583_v36 = vpop.f32.mrf.mxu1 }
 0x367   :  { %v2589_v24 = vmax.f32 %v2583_v36, 0.0 }
 0x368   :  { %v2585_v53 = vpop.f32.mrf.mxu1 }
 0x369   :  { %2590 = vst [vmem:[#allocation2] sm:$0x3] %v2589_v24 }
 0x36a   :  { %v2586_v29 = vpop.f32.mrf.mxu1 }
 0x36b   :  { %3420 = shalt.err (!%p3417_p4)
}
 0x36c   :  { %2600 = dma.vmem_to_hbm [thread:$0]  %s2598_s16, 32, %s4506_s4, [#allocation3]   ;;  %v2587_v54 = vpop.f32.mrf.mxu1 }
 0x36d   :  { %3429 = dma.done.wait [#allocation3], 32  }
 0x36e   :  { %3430 = vsyncadd [#allocation3], 4294967264 }
 0x36f   :  { %2604 = vsyncpa [#allocation3], 1 }

</bundles_post_ra>
